<compile_context>
chip_gen: v7x
topology: tpu7x:2x2x1
jax: 0.10.0
libtpu: 0.0.40
codegen_flags: <defaults>
</compile_context>

<pallas_src>
import jax
import jax.numpy as jnp
from jax.experimental import pallas as pl
from jax.experimental.pallas import tpu as pltpu


def rcnn_lstm_head_kernel(x_ref, wih_ref, whh_ref, b_ref, wout_ref, bout_ref, out_ref):
    """x_ref: (T*B, E) time-major flattened embeddings.
    wih_ref: (4, E, H)   per-gate input weights (PyTorch order i, f, g, o)
    whh_ref: (4, H, H)   per-gate recurrent weights
    b_ref:   (4, 1, H)   per-gate combined bias (b_ih + b_hh)
    wout_ref:(H, OP)     head weights, lane-padded to OP (multiple of 128)
    bout_ref:(1, OP)     head bias, lane-padded
    out_ref: (B, OP)     lane-dense logits (sliced back to O in the wrapper)."""
    TB, _ = x_ref.shape
    H = whh_ref.shape[1]
    B = out_ref.shape[0]
    T = TB // B

    x = x_ref[...]                                                    # (T*B, E)

    # ---- Hoisted input-side gate pre-activations (done ONCE, before the recurrence).
    #      One (T*B, E) @ (E, H) matmul per gate with the bias folded in, so the serial
    #      loop below only needs the h @ W_hh contribution.
    gx = [jnp.dot(x, wih_ref[g], preferred_element_type=jnp.float32) + b_ref[g]
          for g in range(4)]                                          # 4 x (T*B, H)

    # Gate-contiguous recurrent weight tiles (static leading-dim index: free).
    whh_i = whh_ref[0]
    whh_f = whh_ref[1]
    whh_g = whh_ref[2]
    whh_o = whh_ref[3]

    # h0 = c0 = ones (constant state init of the reviewed reference); hoisted, created once.
    h = jnp.ones((B, H), jnp.float32)
    c = jnp.ones((B, H), jnp.float32)

    # ---- Fully unrolled recurrence: T is small and static, so every step is visible to
    #      the scheduler; per step only 4 tiny independent MXU pushes (they pipeline),
    #      EUP sigmoid/tanh, and VPU fma work -- no lane slicing, no per-step bias bcast.
    for t in range(T):
        lo = t * B
        gi = gx[0][lo:lo + B] + jnp.dot(h, whh_i, preferred_element_type=jnp.float32)
        gf = gx[1][lo:lo + B] + jnp.dot(h, whh_f, preferred_element_type=jnp.float32)
        gg = gx[2][lo:lo + B] + jnp.dot(h, whh_g, preferred_element_type=jnp.float32)
        go = gx[3][lo:lo + B] + jnp.dot(h, whh_o, preferred_element_type=jnp.float32)
        i_t = jax.nn.sigmoid(gi)          # EUP
        f_t = jax.nn.sigmoid(gf)
        g_t = jnp.tanh(gg)
        o_t = jax.nn.sigmoid(go)
        c = f_t * c + i_t * g_t           # VPU, all f32 (v5e has no bf16 VPU/EUP)
        h = o_t * jnp.tanh(c)

    # ---- Head: lane-dense (B, OP) store (OP is a multiple of 128 -> unmasked vst).
    out_ref[...] = (jnp.dot(h, wout_ref[...], preferred_element_type=jnp.float32)
                    + bout_ref[...])


def rcnn_forward(tokens, emb_table, w_ih, w_hh, b_ih, b_hh, w_out, b_out):
    """tokens: (B, T) int32. Returns logits (B, output_size) float32."""
    B, T = tokens.shape
    E = emb_table.shape[1]
    H = w_hh.shape[1]
    O = w_out.shape[0]
    OP = ((O + 127) // 128) * 128                     # lane-pad the head output

    # Glue (plain JAX): embedding gather, permute(1,0,2) to time-major, flatten (T*B, E).
    x = jnp.take(jnp.asarray(emb_table, jnp.float32), tokens, axis=0)   # (B, T, E)
    x = jnp.transpose(x, (1, 0, 2)).reshape(T * B, E)                   # (T*B, E)

    # Per-gate weight layout; PyTorch row blocks [i | f | g | o] are preserved by the
    # reshape(4, H, ...) before transposing each block.
    wih4 = jnp.asarray(w_ih, jnp.float32).reshape(4, H, E).transpose(0, 2, 1)  # (4, E, H)
    whh4 = jnp.asarray(w_hh, jnp.float32).reshape(4, H, H).transpose(0, 2, 1)  # (4, H, H)
    b4 = (jnp.asarray(b_ih, jnp.float32)
          + jnp.asarray(b_hh, jnp.float32)).reshape(4, 1, H)                   # (4, 1, H)

    wout_p = jnp.zeros((H, OP), jnp.float32).at[:, :O].set(
        jnp.asarray(w_out, jnp.float32).T)                                     # (H, OP)
    bout_p = jnp.zeros((1, OP), jnp.float32).at[:, :O].set(
        jnp.asarray(b_out, jnp.float32).reshape(1, O))                         # (1, OP)

    # Advisory cost estimate so XLA schedules the gather/transpose around the call sanely.
    flops = 2 * T * B * E * 4 * H + 2 * T * B * H * 4 * H + 2 * B * H * OP
    transcendentals = T * B * 5 * H                     # 4 gate nonlins + tanh(c) per step
    bytes_accessed = 4 * (x.size + wih4.size + whh4.size + b4.size
                          + wout_p.size + bout_p.size + B * OP)

    vmem_spec = pl.BlockSpec(memory_space=pltpu.MemorySpace.VMEM)

    out = pl.pallas_call(
        rcnn_lstm_head_kernel,
        out_shape=jax.ShapeDtypeStruct((B, OP), jnp.float32),
        in_specs=[vmem_spec] * 6,
        out_specs=vmem_spec,
        compiler_params=pltpu.CompilerParams(
            vmem_limit_bytes=32 * 1024 * 1024),         # explicit guard (fits v5e/v6e/v7x)
        cost_estimate=pl.CostEstimate(flops=flops,
                                      transcendentals=transcendentals,
                                      bytes_accessed=bytes_accessed),
    )(x, wih4, whh4, b4, wout_p, bout_p)

    return out[:, :O]


if __name__ == "__main__":
    # Small shapes implied by the module: batch, seq, vocab, embedding, hidden, output.
    B, T = 2, 8
    VOCAB, E, H, OUT = 40, 16, 32, 3

    key = jax.random.PRNGKey(0)
    keys = jax.random.split(key, 8)

    tokens = jax.random.randint(keys[0], (B, T), 0, VOCAB, dtype=jnp.int32)

    # Deterministic synthetic parameters (PyTorch-style uniform(-1/sqrt(H), 1/sqrt(H))).
    emb_table = jax.random.normal(keys[1], (VOCAB, E), dtype=jnp.float32)
    k = 1.0 / jnp.sqrt(jnp.float32(H))
    w_ih = jax.random.uniform(keys[2], (4 * H, E), minval=-k, maxval=k, dtype=jnp.float32)
    w_hh = jax.random.uniform(keys[3], (4 * H, H), minval=-k, maxval=k, dtype=jnp.float32)
    b_ih = jax.random.uniform(keys[4], (4 * H,), minval=-k, maxval=k, dtype=jnp.float32)
    b_hh = jax.random.uniform(keys[5], (4 * H,), minval=-k, maxval=k, dtype=jnp.float32)
    w_out = jax.random.uniform(keys[6], (OUT, H), minval=-k, maxval=k, dtype=jnp.float32)
    b_out = jax.random.uniform(keys[7], (OUT,), minval=-k, maxval=k, dtype=jnp.float32)

    logits = rcnn_forward(tokens, emb_table, w_ih, w_hh, b_ih, b_hh, w_out, b_out)
    jax.block_until_ready(logits)
    assert logits.shape == (B, OUT) and logits.dtype == jnp.float32
    print("KERNEL_OK")
</pallas_src>

<mosaic_0001>
module attributes {stable_mosaic.version = 11 : i64} {
  func.func @rcnn_lstm_head_kernel(%arg0: memref<16x16xf32, #tpu.memory_space<vmem>>, %arg1: memref<4x16x32xf32, #tpu.memory_space<vmem>>, %arg2: memref<4x32x32xf32, #tpu.memory_space<vmem>>, %arg3: memref<4x1x32xf32, #tpu.memory_space<vmem>>, %arg4: memref<32x128xf32, #tpu.memory_space<vmem>>, %arg5: memref<1x128xf32, #tpu.memory_space<vmem>>, %arg6: memref<2x128xf32, #tpu.memory_space<vmem>>) attributes {dimension_semantics = [], scalar_prefetch = 0 : i64, scratch_operands = 0 : i64, tpu.core_type = #tpu.core_type<tc>} {
    %c0 = arith.constant 0 : index
    %c0_0 = arith.constant 0 : index
    %0 = vector.load %arg0[%c0, %c0_0] : memref<16x16xf32, #tpu.memory_space<vmem>>, vector<16x16xf32>
    %c0_1 = arith.constant 0 : index
    %c0_2 = arith.constant 0 : index
    %c0_3 = arith.constant 0 : index
    %1 = vector.load %arg1[%c0_1, %c0_2, %c0_3] : memref<4x16x32xf32, #tpu.memory_space<vmem>>, vector<1x16x32xf32>
    %2 = vector.shape_cast %1 : vector<1x16x32xf32> to vector<16x32xf32>
    %cst = arith.constant dense<0.000000e+00> : vector<16x32xf32>
    %3 = tpu.matmul %0, %2, %cst {dimension_numbers = #tpu.dot_dimension_numbers<[1], [0], [0], [1], [0, 0, 1, 1], [], []>} : vector<16x16xf32>, vector<16x32xf32>, vector<16x32xf32> -> vector<16x32xf32>
    %c0_4 = arith.constant 0 : index
    %c0_5 = arith.constant 0 : index
    %c0_6 = arith.constant 0 : index
    %4 = vector.load %arg3[%c0_4, %c0_5, %c0_6] : memref<4x1x32xf32, #tpu.memory_space<vmem>>, vector<1x1x32xf32>
    %5 = vector.shape_cast %4 : vector<1x1x32xf32> to vector<1x32xf32>
    %6 = vector.broadcast %5 : vector<1x32xf32> to vector<16x32xf32>
    %7 = arith.addf %3, %6 : vector<16x32xf32>
    %c1 = arith.constant 1 : index
    %c0_7 = arith.constant 0 : index
    %c0_8 = arith.constant 0 : index
    %8 = vector.load %arg1[%c1, %c0_7, %c0_8] : memref<4x16x32xf32, #tpu.memory_space<vmem>>, vector<1x16x32xf32>
    %9 = vector.shape_cast %8 : vector<1x16x32xf32> to vector<16x32xf32>
    %cst_9 = arith.constant dense<0.000000e+00> : vector<16x32xf32>
    %10 = tpu.matmul %0, %9, %cst_9 {dimension_numbers = #tpu.dot_dimension_numbers<[1], [0], [0], [1], [0, 0, 1, 1], [], []>} : vector<16x16xf32>, vector<16x32xf32>, vector<16x32xf32> -> vector<16x32xf32>
    %c1_10 = arith.constant 1 : index
    %c0_11 = arith.constant 0 : index
    %c0_12 = arith.constant 0 : index
    %11 = vector.load %arg3[%c1_10, %c0_11, %c0_12] : memref<4x1x32xf32, #tpu.memory_space<vmem>>, vector<1x1x32xf32>
    %12 = vector.shape_cast %11 : vector<1x1x32xf32> to vector<1x32xf32>
    %13 = vector.broadcast %12 : vector<1x32xf32> to vector<16x32xf32>
    %14 = arith.addf %10, %13 : vector<16x32xf32>
    %c2 = arith.constant 2 : index
    %c0_13 = arith.constant 0 : index
    %c0_14 = arith.constant 0 : index
    %15 = vector.load %arg1[%c2, %c0_13, %c0_14] : memref<4x16x32xf32, #tpu.memory_space<vmem>>, vector<1x16x32xf32>
    %16 = vector.shape_cast %15 : vector<1x16x32xf32> to vector<16x32xf32>
    %cst_15 = arith.constant dense<0.000000e+00> : vector<16x32xf32>
    %17 = tpu.matmul %0, %16, %cst_15 {dimension_numbers = #tpu.dot_dimension_numbers<[1], [0], [0], [1], [0, 0, 1, 1], [], []>} : vector<16x16xf32>, vector<16x32xf32>, vector<16x32xf32> -> vector<16x32xf32>
    %c2_16 = arith.constant 2 : index
    %c0_17 = arith.constant 0 : index
    %c0_18 = arith.constant 0 : index
    %18 = vector.load %arg3[%c2_16, %c0_17, %c0_18] : memref<4x1x32xf32, #tpu.memory_space<vmem>>, vector<1x1x32xf32>
    %19 = vector.shape_cast %18 : vector<1x1x32xf32> to vector<1x32xf32>
    %20 = vector.broadcast %19 : vector<1x32xf32> to vector<16x32xf32>
    %21 = arith.addf %17, %20 : vector<16x32xf32>
    %c3 = arith.constant 3 : index
    %c0_19 = arith.constant 0 : index
    %c0_20 = arith.constant 0 : index
    %22 = vector.load %arg1[%c3, %c0_19, %c0_20] : memref<4x16x32xf32, #tpu.memory_space<vmem>>, vector<1x16x32xf32>
    %23 = vector.shape_cast %22 : vector<1x16x32xf32> to vector<16x32xf32>
    %cst_21 = arith.constant dense<0.000000e+00> : vector<16x32xf32>
    %24 = tpu.matmul %0, %23, %cst_21 {dimension_numbers = #tpu.dot_dimension_numbers<[1], [0], [0], [1], [0, 0, 1, 1], [], []>} : vector<16x16xf32>, vector<16x32xf32>, vector<16x32xf32> -> vector<16x32xf32>
    %c3_22 = arith.constant 3 : index
    %c0_23 = arith.constant 0 : index
    %c0_24 = arith.constant 0 : index
    %25 = vector.load %arg3[%c3_22, %c0_23, %c0_24] : memref<4x1x32xf32, #tpu.memory_space<vmem>>, vector<1x1x32xf32>
    %26 = vector.shape_cast %25 : vector<1x1x32xf32> to vector<1x32xf32>
    %27 = vector.broadcast %26 : vector<1x32xf32> to vector<16x32xf32>
    %28 = arith.addf %24, %27 : vector<16x32xf32>
    %c0_25 = arith.constant 0 : index
    %c0_26 = arith.constant 0 : index
    %c0_27 = arith.constant 0 : index
    %29 = vector.load %arg2[%c0_25, %c0_26, %c0_27] : memref<4x32x32xf32, #tpu.memory_space<vmem>>, vector<1x32x32xf32>
    %30 = vector.shape_cast %29 : vector<1x32x32xf32> to vector<32x32xf32>
    %c1_28 = arith.constant 1 : index
    %c0_29 = arith.constant 0 : index
    %c0_30 = arith.constant 0 : index
    %31 = vector.load %arg2[%c1_28, %c0_29, %c0_30] : memref<4x32x32xf32, #tpu.memory_space<vmem>>, vector<1x32x32xf32>
    %32 = vector.shape_cast %31 : vector<1x32x32xf32> to vector<32x32xf32>
    %c2_31 = arith.constant 2 : index
    %c0_32 = arith.constant 0 : index
    %c0_33 = arith.constant 0 : index
    %33 = vector.load %arg2[%c2_31, %c0_32, %c0_33] : memref<4x32x32xf32, #tpu.memory_space<vmem>>, vector<1x32x32xf32>
    %34 = vector.shape_cast %33 : vector<1x32x32xf32> to vector<32x32xf32>
    %c3_34 = arith.constant 3 : index
    %c0_35 = arith.constant 0 : index
    %c0_36 = arith.constant 0 : index
    %35 = vector.load %arg2[%c3_34, %c0_35, %c0_36] : memref<4x32x32xf32, #tpu.memory_space<vmem>>, vector<1x32x32xf32>
    %36 = vector.shape_cast %35 : vector<1x32x32xf32> to vector<32x32xf32>
    %cst_37 = arith.constant 1.000000e+00 : f32
    %37 = vector.broadcast %cst_37 : f32 to vector<2x32xf32>
    %cst_38 = arith.constant 1.000000e+00 : f32
    %38 = vector.broadcast %cst_38 : f32 to vector<2x32xf32>
    %39 = vector.extract_strided_slice %7 {offsets = [0, 0], sizes = [2, 32], strides = [1, 1]} : vector<16x32xf32> to vector<2x32xf32>
    %cst_39 = arith.constant dense<0.000000e+00> : vector<2x32xf32>
    %40 = tpu.matmul %37, %30, %cst_39 {dimension_numbers = #tpu.dot_dimension_numbers<[1], [0], [0], [1], [0, 0, 1, 1], [], []>} : vector<2x32xf32>, vector<32x32xf32>, vector<2x32xf32> -> vector<2x32xf32>
    %41 = arith.addf %39, %40 : vector<2x32xf32>
    %42 = vector.extract_strided_slice %14 {offsets = [0, 0], sizes = [2, 32], strides = [1, 1]} : vector<16x32xf32> to vector<2x32xf32>
    %cst_40 = arith.constant dense<0.000000e+00> : vector<2x32xf32>
    %43 = tpu.matmul %37, %32, %cst_40 {dimension_numbers = #tpu.dot_dimension_numbers<[1], [0], [0], [1], [0, 0, 1, 1], [], []>} : vector<2x32xf32>, vector<32x32xf32>, vector<2x32xf32> -> vector<2x32xf32>
    %44 = arith.addf %42, %43 : vector<2x32xf32>
    %45 = vector.extract_strided_slice %21 {offsets = [0, 0], sizes = [2, 32], strides = [1, 1]} : vector<16x32xf32> to vector<2x32xf32>
    %cst_41 = arith.constant dense<0.000000e+00> : vector<2x32xf32>
    %46 = tpu.matmul %37, %34, %cst_41 {dimension_numbers = #tpu.dot_dimension_numbers<[1], [0], [0], [1], [0, 0, 1, 1], [], []>} : vector<2x32xf32>, vector<32x32xf32>, vector<2x32xf32> -> vector<2x32xf32>
    %47 = arith.addf %45, %46 : vector<2x32xf32>
    %48 = vector.extract_strided_slice %28 {offsets = [0, 0], sizes = [2, 32], strides = [1, 1]} : vector<16x32xf32> to vector<2x32xf32>
    %cst_42 = arith.constant dense<0.000000e+00> : vector<2x32xf32>
    %49 = tpu.matmul %37, %36, %cst_42 {dimension_numbers = #tpu.dot_dimension_numbers<[1], [0], [0], [1], [0, 0, 1, 1], [], []>} : vector<2x32xf32>, vector<32x32xf32>, vector<2x32xf32> -> vector<2x32xf32>
    %50 = arith.addf %48, %49 : vector<2x32xf32>
    %51 = arith.negf %41 : vector<2x32xf32>
    %52 = math.exp %51 : vector<2x32xf32>
    %cst_43 = arith.constant 1.000000e+00 : f32
    %53 = vector.broadcast %cst_43 : f32 to vector<2x32xf32>
    %54 = arith.addf %53, %52 : vector<2x32xf32>
    %55 = arith.divf %53, %54 : vector<2x32xf32>
    %56 = arith.negf %44 : vector<2x32xf32>
    %57 = math.exp %56 : vector<2x32xf32>
    %cst_44 = arith.constant 1.000000e+00 : f32
    %58 = vector.broadcast %cst_44 : f32 to vector<2x32xf32>
    %59 = arith.addf %58, %57 : vector<2x32xf32>
    %60 = arith.divf %58, %59 : vector<2x32xf32>
    %61 = math.tanh %47 : vector<2x32xf32>
    %62 = arith.negf %50 : vector<2x32xf32>
    %63 = math.exp %62 : vector<2x32xf32>
    %cst_45 = arith.constant 1.000000e+00 : f32
    %64 = vector.broadcast %cst_45 : f32 to vector<2x32xf32>
    %65 = arith.addf %64, %63 : vector<2x32xf32>
    %66 = arith.divf %64, %65 : vector<2x32xf32>
    %67 = arith.mulf %60, %38 : vector<2x32xf32>
    %68 = arith.mulf %55, %61 : vector<2x32xf32>
    %69 = arith.addf %67, %68 : vector<2x32xf32>
    %70 = math.tanh %69 : vector<2x32xf32>
    %71 = arith.mulf %66, %70 : vector<2x32xf32>
    %72 = vector.extract_strided_slice %7 {offsets = [2, 0], sizes = [2, 32], strides = [1, 1]} : vector<16x32xf32> to vector<2x32xf32>
    %cst_46 = arith.constant dense<0.000000e+00> : vector<2x32xf32>
    %73 = tpu.matmul %71, %30, %cst_46 {dimension_numbers = #tpu.dot_dimension_numbers<[1], [0], [0], [1], [0, 0, 1, 1], [], []>} : vector<2x32xf32>, vector<32x32xf32>, vector<2x32xf32> -> vector<2x32xf32>
    %74 = arith.addf %72, %73 : vector<2x32xf32>
    %75 = vector.extract_strided_slice %14 {offsets = [2, 0], sizes = [2, 32], strides = [1, 1]} : vector<16x32xf32> to vector<2x32xf32>
    %cst_47 = arith.constant dense<0.000000e+00> : vector<2x32xf32>
    %76 = tpu.matmul %71, %32, %cst_47 {dimension_numbers = #tpu.dot_dimension_numbers<[1], [0], [0], [1], [0, 0, 1, 1], [], []>} : vector<2x32xf32>, vector<32x32xf32>, vector<2x32xf32> -> vector<2x32xf32>
    %77 = arith.addf %75, %76 : vector<2x32xf32>
    %78 = vector.extract_strided_slice %21 {offsets = [2, 0], sizes = [2, 32], strides = [1, 1]} : vector<16x32xf32> to vector<2x32xf32>
    %cst_48 = arith.constant dense<0.000000e+00> : vector<2x32xf32>
    %79 = tpu.matmul %71, %34, %cst_48 {dimension_numbers = #tpu.dot_dimension_numbers<[1], [0], [0], [1], [0, 0, 1, 1], [], []>} : vector<2x32xf32>, vector<32x32xf32>, vector<2x32xf32> -> vector<2x32xf32>
    %80 = arith.addf %78, %79 : vector<2x32xf32>
    %81 = vector.extract_strided_slice %28 {offsets = [2, 0], sizes = [2, 32], strides = [1, 1]} : vector<16x32xf32> to vector<2x32xf32>
    %cst_49 = arith.constant dense<0.000000e+00> : vector<2x32xf32>
    %82 = tpu.matmul %71, %36, %cst_49 {dimension_numbers = #tpu.dot_dimension_numbers<[1], [0], [0], [1], [0, 0, 1, 1], [], []>} : vector<2x32xf32>, vector<32x32xf32>, vector<2x32xf32> -> vector<2x32xf32>
    %83 = arith.addf %81, %82 : vector<2x32xf32>
    %84 = arith.negf %74 : vector<2x32xf32>
    %85 = math.exp %84 : vector<2x32xf32>
    %cst_50 = arith.constant 1.000000e+00 : f32
    %86 = vector.broadcast %cst_50 : f32 to vector<2x32xf32>
    %87 = arith.addf %86, %85 : vector<2x32xf32>
    %88 = arith.divf %86, %87 : vector<2x32xf32>
    %89 = arith.negf %77 : vector<2x32xf32>
    %90 = math.exp %89 : vector<2x32xf32>
    %cst_51 = arith.constant 1.000000e+00 : f32
    %91 = vector.broadcast %cst_51 : f32 to vector<2x32xf32>
    %92 = arith.addf %91, %90 : vector<2x32xf32>
    %93 = arith.divf %91, %92 : vector<2x32xf32>
    %94 = math.tanh %80 : vector<2x32xf32>
    %95 = arith.negf %83 : vector<2x32xf32>
    %96 = math.exp %95 : vector<2x32xf32>
    %cst_52 = arith.constant 1.000000e+00 : f32
    %97 = vector.broadcast %cst_52 : f32 to vector<2x32xf32>
    %98 = arith.addf %97, %96 : vector<2x32xf32>
    %99 = arith.divf %97, %98 : vector<2x32xf32>
    %100 = arith.mulf %93, %69 : vector<2x32xf32>
    %101 = arith.mulf %88, %94 : vector<2x32xf32>
    %102 = arith.addf %100, %101 : vector<2x32xf32>
    %103 = math.tanh %102 : vector<2x32xf32>
    %104 = arith.mulf %99, %103 : vector<2x32xf32>
    %105 = vector.extract_strided_slice %7 {offsets = [4, 0], sizes = [2, 32], strides = [1, 1]} : vector<16x32xf32> to vector<2x32xf32>
    %cst_53 = arith.constant dense<0.000000e+00> : vector<2x32xf32>
    %106 = tpu.matmul %104, %30, %cst_53 {dimension_numbers = #tpu.dot_dimension_numbers<[1], [0], [0], [1], [0, 0, 1, 1], [], []>} : vector<2x32xf32>, vector<32x32xf32>, vector<2x32xf32> -> vector<2x32xf32>
    %107 = arith.addf %105, %106 : vector<2x32xf32>
    %108 = vector.extract_strided_slice %14 {offsets = [4, 0], sizes = [2, 32], strides = [1, 1]} : vector<16x32xf32> to vector<2x32xf32>
    %cst_54 = arith.constant dense<0.000000e+00> : vector<2x32xf32>
    %109 = tpu.matmul %104, %32, %cst_54 {dimension_numbers = #tpu.dot_dimension_numbers<[1], [0], [0], [1], [0, 0, 1, 1], [], []>} : vector<2x32xf32>, vector<32x32xf32>, vector<2x32xf32> -> vector<2x32xf32>
    %110 = arith.addf %108, %109 : vector<2x32xf32>
    %111 = vector.extract_strided_slice %21 {offsets = [4, 0], sizes = [2, 32], strides = [1, 1]} : vector<16x32xf32> to vector<2x32xf32>
    %cst_55 = arith.constant dense<0.000000e+00> : vector<2x32xf32>
    %112 = tpu.matmul %104, %34, %cst_55 {dimension_numbers = #tpu.dot_dimension_numbers<[1], [0], [0], [1], [0, 0, 1, 1], [], []>} : vector<2x32xf32>, vector<32x32xf32>, vector<2x32xf32> -> vector<2x32xf32>
    %113 = arith.addf %111, %112 : vector<2x32xf32>
    %114 = vector.extract_strided_slice %28 {offsets = [4, 0], sizes = [2, 32], strides = [1, 1]} : vector<16x32xf32> to vector<2x32xf32>
    %cst_56 = arith.constant dense<0.000000e+00> : vector<2x32xf32>
    %115 = tpu.matmul %104, %36, %cst_56 {dimension_numbers = #tpu.dot_dimension_numbers<[1], [0], [0], [1], [0, 0, 1, 1], [], []>} : vector<2x32xf32>, vector<32x32xf32>, vector<2x32xf32> -> vector<2x32xf32>
    %116 = arith.addf %114, %115 : vector<2x32xf32>
    %117 = arith.negf %107 : vector<2x32xf32>
    %118 = math.exp %117 : vector<2x32xf32>
    %cst_57 = arith.constant 1.000000e+00 : f32
    %119 = vector.broadcast %cst_57 : f32 to vector<2x32xf32>
    %120 = arith.addf %119, %118 : vector<2x32xf32>
    %121 = arith.divf %119, %120 : vector<2x32xf32>
    %122 = arith.negf %110 : vector<2x32xf32>
    %123 = math.exp %122 : vector<2x32xf32>
    %cst_58 = arith.constant 1.000000e+00 : f32
    %124 = vector.broadcast %cst_58 : f32 to vector<2x32xf32>
    %125 = arith.addf %124, %123 : vector<2x32xf32>
    %126 = arith.divf %124, %125 : vector<2x32xf32>
    %127 = math.tanh %113 : vector<2x32xf32>
    %128 = arith.negf %116 : vector<2x32xf32>
    %129 = math.exp %128 : vector<2x32xf32>
    %cst_59 = arith.constant 1.000000e+00 : f32
    %130 = vector.broadcast %cst_59 : f32 to vector<2x32xf32>
    %131 = arith.addf %130, %129 : vector<2x32xf32>
    %132 = arith.divf %130, %131 : vector<2x32xf32>
    %133 = arith.mulf %126, %102 : vector<2x32xf32>
    %134 = arith.mulf %121, %127 : vector<2x32xf32>
    %135 = arith.addf %133, %134 : vector<2x32xf32>
    %136 = math.tanh %135 : vector<2x32xf32>
    %137 = arith.mulf %132, %136 : vector<2x32xf32>
    %138 = vector.extract_strided_slice %7 {offsets = [6, 0], sizes = [2, 32], strides = [1, 1]} : vector<16x32xf32> to vector<2x32xf32>
    %cst_60 = arith.constant dense<0.000000e+00> : vector<2x32xf32>
    %139 = tpu.matmul %137, %30, %cst_60 {dimension_numbers = #tpu.dot_dimension_numbers<[1], [0], [0], [1], [0, 0, 1, 1], [], []>} : vector<2x32xf32>, vector<32x32xf32>, vector<2x32xf32> -> vector<2x32xf32>
    %140 = arith.addf %138, %139 : vector<2x32xf32>
    %141 = vector.extract_strided_slice %14 {offsets = [6, 0], sizes = [2, 32], strides = [1, 1]} : vector<16x32xf32> to vector<2x32xf32>
    %cst_61 = arith.constant dense<0.000000e+00> : vector<2x32xf32>
    %142 = tpu.matmul %137, %32, %cst_61 {dimension_numbers = #tpu.dot_dimension_numbers<[1], [0], [0], [1], [0, 0, 1, 1], [], []>} : vector<2x32xf32>, vector<32x32xf32>, vector<2x32xf32> -> vector<2x32xf32>
    %143 = arith.addf %141, %142 : vector<2x32xf32>
    %144 = vector.extract_strided_slice %21 {offsets = [6, 0], sizes = [2, 32], strides = [1, 1]} : vector<16x32xf32> to vector<2x32xf32>
    %cst_62 = arith.constant dense<0.000000e+00> : vector<2x32xf32>
    %145 = tpu.matmul %137, %34, %cst_62 {dimension_numbers = #tpu.dot_dimension_numbers<[1], [0], [0], [1], [0, 0, 1, 1], [], []>} : vector<2x32xf32>, vector<32x32xf32>, vector<2x32xf32> -> vector<2x32xf32>
    %146 = arith.addf %144, %145 : vector<2x32xf32>
    %147 = vector.extract_strided_slice %28 {offsets = [6, 0], sizes = [2, 32], strides = [1, 1]} : vector<16x32xf32> to vector<2x32xf32>
    %cst_63 = arith.constant dense<0.000000e+00> : vector<2x32xf32>
    %148 = tpu.matmul %137, %36, %cst_63 {dimension_numbers = #tpu.dot_dimension_numbers<[1], [0], [0], [1], [0, 0, 1, 1], [], []>} : vector<2x32xf32>, vector<32x32xf32>, vector<2x32xf32> -> vector<2x32xf32>
    %149 = arith.addf %147, %148 : vector<2x32xf32>
    %150 = arith.negf %140 : vector<2x32xf32>
    %151 = math.exp %150 : vector<2x32xf32>
    %cst_64 = arith.constant 1.000000e+00 : f32
    %152 = vector.broadcast %cst_64 : f32 to vector<2x32xf32>
    %153 = arith.addf %152, %151 : vector<2x32xf32>
    %154 = arith.divf %152, %153 : vector<2x32xf32>
    %155 = arith.negf %143 : vector<2x32xf32>
    %156 = math.exp %155 : vector<2x32xf32>
    %cst_65 = arith.constant 1.000000e+00 : f32
    %157 = vector.broadcast %cst_65 : f32 to vector<2x32xf32>
    %158 = arith.addf %157, %156 : vector<2x32xf32>
    %159 = arith.divf %157, %158 : vector<2x32xf32>
    %160 = math.tanh %146 : vector<2x32xf32>
    %161 = arith.negf %149 : vector<2x32xf32>
    %162 = math.exp %161 : vector<2x32xf32>
    %cst_66 = arith.constant 1.000000e+00 : f32
    %163 = vector.broadcast %cst_66 : f32 to vector<2x32xf32>
    %164 = arith.addf %163, %162 : vector<2x32xf32>
    %165 = arith.divf %163, %164 : vector<2x32xf32>
    %166 = arith.mulf %159, %135 : vector<2x32xf32>
    %167 = arith.mulf %154, %160 : vector<2x32xf32>
    %168 = arith.addf %166, %167 : vector<2x32xf32>
    %169 = math.tanh %168 : vector<2x32xf32>
    %170 = arith.mulf %165, %169 : vector<2x32xf32>
    %171 = vector.extract_strided_slice %7 {offsets = [8, 0], sizes = [2, 32], strides = [1, 1]} : vector<16x32xf32> to vector<2x32xf32>
    %cst_67 = arith.constant dense<0.000000e+00> : vector<2x32xf32>
    %172 = tpu.matmul %170, %30, %cst_67 {dimension_numbers = #tpu.dot_dimension_numbers<[1], [0], [0], [1], [0, 0, 1, 1], [], []>} : vector<2x32xf32>, vector<32x32xf32>, vector<2x32xf32> -> vector<2x32xf32>
    %173 = arith.addf %171, %172 : vector<2x32xf32>
    %174 = vector.extract_strided_slice %14 {offsets = [8, 0], sizes = [2, 32], strides = [1, 1]} : vector<16x32xf32> to vector<2x32xf32>
    %cst_68 = arith.constant dense<0.000000e+00> : vector<2x32xf32>
    %175 = tpu.matmul %170, %32, %cst_68 {dimension_numbers = #tpu.dot_dimension_numbers<[1], [0], [0], [1], [0, 0, 1, 1], [], []>} : vector<2x32xf32>, vector<32x32xf32>, vector<2x32xf32> -> vector<2x32xf32>
    %176 = arith.addf %174, %175 : vector<2x32xf32>
    %177 = vector.extract_strided_slice %21 {offsets = [8, 0], sizes = [2, 32], strides = [1, 1]} : vector<16x32xf32> to vector<2x32xf32>
    %cst_69 = arith.constant dense<0.000000e+00> : vector<2x32xf32>
    %178 = tpu.matmul %170, %34, %cst_69 {dimension_numbers = #tpu.dot_dimension_numbers<[1], [0], [0], [1], [0, 0, 1, 1], [], []>} : vector<2x32xf32>, vector<32x32xf32>, vector<2x32xf32> -> vector<2x32xf32>
    %179 = arith.addf %177, %178 : vector<2x32xf32>
    %180 = vector.extract_strided_slice %28 {offsets = [8, 0], sizes = [2, 32], strides = [1, 1]} : vector<16x32xf32> to vector<2x32xf32>
    %cst_70 = arith.constant dense<0.000000e+00> : vector<2x32xf32>
    %181 = tpu.matmul %170, %36, %cst_70 {dimension_numbers = #tpu.dot_dimension_numbers<[1], [0], [0], [1], [0, 0, 1, 1], [], []>} : vector<2x32xf32>, vector<32x32xf32>, vector<2x32xf32> -> vector<2x32xf32>
    %182 = arith.addf %180, %181 : vector<2x32xf32>
    %183 = arith.negf %173 : vector<2x32xf32>
    %184 = math.exp %183 : vector<2x32xf32>
    %cst_71 = arith.constant 1.000000e+00 : f32
    %185 = vector.broadcast %cst_71 : f32 to vector<2x32xf32>
    %186 = arith.addf %185, %184 : vector<2x32xf32>
    %187 = arith.divf %185, %186 : vector<2x32xf32>
    %188 = arith.negf %176 : vector<2x32xf32>
    %189 = math.exp %188 : vector<2x32xf32>
    %cst_72 = arith.constant 1.000000e+00 : f32
    %190 = vector.broadcast %cst_72 : f32 to vector<2x32xf32>
    %191 = arith.addf %190, %189 : vector<2x32xf32>
    %192 = arith.divf %190, %191 : vector<2x32xf32>
    %193 = math.tanh %179 : vector<2x32xf32>
    %194 = arith.negf %182 : vector<2x32xf32>
    %195 = math.exp %194 : vector<2x32xf32>
    %cst_73 = arith.constant 1.000000e+00 : f32
    %196 = vector.broadcast %cst_73 : f32 to vector<2x32xf32>
    %197 = arith.addf %196, %195 : vector<2x32xf32>
    %198 = arith.divf %196, %197 : vector<2x32xf32>
    %199 = arith.mulf %192, %168 : vector<2x32xf32>
    %200 = arith.mulf %187, %193 : vector<2x32xf32>
    %201 = arith.addf %199, %200 : vector<2x32xf32>
    %202 = math.tanh %201 : vector<2x32xf32>
    %203 = arith.mulf %198, %202 : vector<2x32xf32>
    %204 = vector.extract_strided_slice %7 {offsets = [10, 0], sizes = [2, 32], strides = [1, 1]} : vector<16x32xf32> to vector<2x32xf32>
    %cst_74 = arith.constant dense<0.000000e+00> : vector<2x32xf32>
    %205 = tpu.matmul %203, %30, %cst_74 {dimension_numbers = #tpu.dot_dimension_numbers<[1], [0], [0], [1], [0, 0, 1, 1], [], []>} : vector<2x32xf32>, vector<32x32xf32>, vector<2x32xf32> -> vector<2x32xf32>
    %206 = arith.addf %204, %205 : vector<2x32xf32>
    %207 = vector.extract_strided_slice %14 {offsets = [10, 0], sizes = [2, 32], strides = [1, 1]} : vector<16x32xf32> to vector<2x32xf32>
    %cst_75 = arith.constant dense<0.000000e+00> : vector<2x32xf32>
    %208 = tpu.matmul %203, %32, %cst_75 {dimension_numbers = #tpu.dot_dimension_numbers<[1], [0], [0], [1], [0, 0, 1, 1], [], []>} : vector<2x32xf32>, vector<32x32xf32>, vector<2x32xf32> -> vector<2x32xf32>
    %209 = arith.addf %207, %208 : vector<2x32xf32>
    %210 = vector.extract_strided_slice %21 {offsets = [10, 0], sizes = [2, 32], strides = [1, 1]} : vector<16x32xf32> to vector<2x32xf32>
    %cst_76 = arith.constant dense<0.000000e+00> : vector<2x32xf32>
    %211 = tpu.matmul %203, %34, %cst_76 {dimension_numbers = #tpu.dot_dimension_numbers<[1], [0], [0], [1], [0, 0, 1, 1], [], []>} : vector<2x32xf32>, vector<32x32xf32>, vector<2x32xf32> -> vector<2x32xf32>
    %212 = arith.addf %210, %211 : vector<2x32xf32>
    %213 = vector.extract_strided_slice %28 {offsets = [10, 0], sizes = [2, 32], strides = [1, 1]} : vector<16x32xf32> to vector<2x32xf32>
    %cst_77 = arith.constant dense<0.000000e+00> : vector<2x32xf32>
    %214 = tpu.matmul %203, %36, %cst_77 {dimension_numbers = #tpu.dot_dimension_numbers<[1], [0], [0], [1], [0, 0, 1, 1], [], []>} : vector<2x32xf32>, vector<32x32xf32>, vector<2x32xf32> -> vector<2x32xf32>
    %215 = arith.addf %213, %214 : vector<2x32xf32>
    %216 = arith.negf %206 : vector<2x32xf32>
    %217 = math.exp %216 : vector<2x32xf32>
    %cst_78 = arith.constant 1.000000e+00 : f32
    %218 = vector.broadcast %cst_78 : f32 to vector<2x32xf32>
    %219 = arith.addf %218, %217 : vector<2x32xf32>
    %220 = arith.divf %218, %219 : vector<2x32xf32>
    %221 = arith.negf %209 : vector<2x32xf32>
    %222 = math.exp %221 : vector<2x32xf32>
    %cst_79 = arith.constant 1.000000e+00 : f32
    %223 = vector.broadcast %cst_79 : f32 to vector<2x32xf32>
    %224 = arith.addf %223, %222 : vector<2x32xf32>
    %225 = arith.divf %223, %224 : vector<2x32xf32>
    %226 = math.tanh %212 : vector<2x32xf32>
    %227 = arith.negf %215 : vector<2x32xf32>
    %228 = math.exp %227 : vector<2x32xf32>
    %cst_80 = arith.constant 1.000000e+00 : f32
    %229 = vector.broadcast %cst_80 : f32 to vector<2x32xf32>
    %230 = arith.addf %229, %228 : vector<2x32xf32>
    %231 = arith.divf %229, %230 : vector<2x32xf32>
    %232 = arith.mulf %225, %201 : vector<2x32xf32>
    %233 = arith.mulf %220, %226 : vector<2x32xf32>
    %234 = arith.addf %232, %233 : vector<2x32xf32>
    %235 = math.tanh %234 : vector<2x32xf32>
    %236 = arith.mulf %231, %235 : vector<2x32xf32>
    %237 = vector.extract_strided_slice %7 {offsets = [12, 0], sizes = [2, 32], strides = [1, 1]} : vector<16x32xf32> to vector<2x32xf32>
    %cst_81 = arith.constant dense<0.000000e+00> : vector<2x32xf32>
    %238 = tpu.matmul %236, %30, %cst_81 {dimension_numbers = #tpu.dot_dimension_numbers<[1], [0], [0], [1], [0, 0, 1, 1], [], []>} : vector<2x32xf32>, vector<32x32xf32>, vector<2x32xf32> -> vector<2x32xf32>
    %239 = arith.addf %237, %238 : vector<2x32xf32>
    %240 = vector.extract_strided_slice %14 {offsets = [12, 0], sizes = [2, 32], strides = [1, 1]} : vector<16x32xf32> to vector<2x32xf32>
    %cst_82 = arith.constant dense<0.000000e+00> : vector<2x32xf32>
    %241 = tpu.matmul %236, %32, %cst_82 {dimension_numbers = #tpu.dot_dimension_numbers<[1], [0], [0], [1], [0, 0, 1, 1], [], []>} : vector<2x32xf32>, vector<32x32xf32>, vector<2x32xf32> -> vector<2x32xf32>
    %242 = arith.addf %240, %241 : vector<2x32xf32>
    %243 = vector.extract_strided_slice %21 {offsets = [12, 0], sizes = [2, 32], strides = [1, 1]} : vector<16x32xf32> to vector<2x32xf32>
    %cst_83 = arith.constant dense<0.000000e+00> : vector<2x32xf32>
    %244 = tpu.matmul %236, %34, %cst_83 {dimension_numbers = #tpu.dot_dimension_numbers<[1], [0], [0], [1], [0, 0, 1, 1], [], []>} : vector<2x32xf32>, vector<32x32xf32>, vector<2x32xf32> -> vector<2x32xf32>
    %245 = arith.addf %243, %244 : vector<2x32xf32>
    %246 = vector.extract_strided_slice %28 {offsets = [12, 0], sizes = [2, 32], strides = [1, 1]} : vector<16x32xf32> to vector<2x32xf32>
    %cst_84 = arith.constant dense<0.000000e+00> : vector<2x32xf32>
    %247 = tpu.matmul %236, %36, %cst_84 {dimension_numbers = #tpu.dot_dimension_numbers<[1], [0], [0], [1], [0, 0, 1, 1], [], []>} : vector<2x32xf32>, vector<32x32xf32>, vector<2x32xf32> -> vector<2x32xf32>
    %248 = arith.addf %246, %247 : vector<2x32xf32>
    %249 = arith.negf %239 : vector<2x32xf32>
    %250 = math.exp %249 : vector<2x32xf32>
    %cst_85 = arith.constant 1.000000e+00 : f32
    %251 = vector.broadcast %cst_85 : f32 to vector<2x32xf32>
    %252 = arith.addf %251, %250 : vector<2x32xf32>
    %253 = arith.divf %251, %252 : vector<2x32xf32>
    %254 = arith.negf %242 : vector<2x32xf32>
    %255 = math.exp %254 : vector<2x32xf32>
    %cst_86 = arith.constant 1.000000e+00 : f32
    %256 = vector.broadcast %cst_86 : f32 to vector<2x32xf32>
    %257 = arith.addf %256, %255 : vector<2x32xf32>
    %258 = arith.divf %256, %257 : vector<2x32xf32>
    %259 = math.tanh %245 : vector<2x32xf32>
    %260 = arith.negf %248 : vector<2x32xf32>
    %261 = math.exp %260 : vector<2x32xf32>
    %cst_87 = arith.constant 1.000000e+00 : f32
    %262 = vector.broadcast %cst_87 : f32 to vector<2x32xf32>
    %263 = arith.addf %262, %261 : vector<2x32xf32>
    %264 = arith.divf %262, %263 : vector<2x32xf32>
    %265 = arith.mulf %258, %234 : vector<2x32xf32>
    %266 = arith.mulf %253, %259 : vector<2x32xf32>
    %267 = arith.addf %265, %266 : vector<2x32xf32>
    %268 = math.tanh %267 : vector<2x32xf32>
    %269 = arith.mulf %264, %268 : vector<2x32xf32>
    %270 = vector.extract_strided_slice %7 {offsets = [14, 0], sizes = [2, 32], strides = [1, 1]} : vector<16x32xf32> to vector<2x32xf32>
    %cst_88 = arith.constant dense<0.000000e+00> : vector<2x32xf32>
    %271 = tpu.matmul %269, %30, %cst_88 {dimension_numbers = #tpu.dot_dimension_numbers<[1], [0], [0], [1], [0, 0, 1, 1], [], []>} : vector<2x32xf32>, vector<32x32xf32>, vector<2x32xf32> -> vector<2x32xf32>
    %272 = arith.addf %270, %271 : vector<2x32xf32>
    %273 = vector.extract_strided_slice %14 {offsets = [14, 0], sizes = [2, 32], strides = [1, 1]} : vector<16x32xf32> to vector<2x32xf32>
    %cst_89 = arith.constant dense<0.000000e+00> : vector<2x32xf32>
    %274 = tpu.matmul %269, %32, %cst_89 {dimension_numbers = #tpu.dot_dimension_numbers<[1], [0], [0], [1], [0, 0, 1, 1], [], []>} : vector<2x32xf32>, vector<32x32xf32>, vector<2x32xf32> -> vector<2x32xf32>
    %275 = arith.addf %273, %274 : vector<2x32xf32>
    %276 = vector.extract_strided_slice %21 {offsets = [14, 0], sizes = [2, 32], strides = [1, 1]} : vector<16x32xf32> to vector<2x32xf32>
    %cst_90 = arith.constant dense<0.000000e+00> : vector<2x32xf32>
    %277 = tpu.matmul %269, %34, %cst_90 {dimension_numbers = #tpu.dot_dimension_numbers<[1], [0], [0], [1], [0, 0, 1, 1], [], []>} : vector<2x32xf32>, vector<32x32xf32>, vector<2x32xf32> -> vector<2x32xf32>
    %278 = arith.addf %276, %277 : vector<2x32xf32>
    %279 = vector.extract_strided_slice %28 {offsets = [14, 0], sizes = [2, 32], strides = [1, 1]} : vector<16x32xf32> to vector<2x32xf32>
    %cst_91 = arith.constant dense<0.000000e+00> : vector<2x32xf32>
    %280 = tpu.matmul %269, %36, %cst_91 {dimension_numbers = #tpu.dot_dimension_numbers<[1], [0], [0], [1], [0, 0, 1, 1], [], []>} : vector<2x32xf32>, vector<32x32xf32>, vector<2x32xf32> -> vector<2x32xf32>
    %281 = arith.addf %279, %280 : vector<2x32xf32>
    %282 = arith.negf %272 : vector<2x32xf32>
    %283 = math.exp %282 : vector<2x32xf32>
    %cst_92 = arith.constant 1.000000e+00 : f32
    %284 = vector.broadcast %cst_92 : f32 to vector<2x32xf32>
    %285 = arith.addf %284, %283 : vector<2x32xf32>
    %286 = arith.divf %284, %285 : vector<2x32xf32>
    %287 = arith.negf %275 : vector<2x32xf32>
    %288 = math.exp %287 : vector<2x32xf32>
    %cst_93 = arith.constant 1.000000e+00 : f32
    %289 = vector.broadcast %cst_93 : f32 to vector<2x32xf32>
    %290 = arith.addf %289, %288 : vector<2x32xf32>
    %291 = arith.divf %289, %290 : vector<2x32xf32>
    %292 = math.tanh %278 : vector<2x32xf32>
    %293 = arith.negf %281 : vector<2x32xf32>
    %294 = math.exp %293 : vector<2x32xf32>
    %cst_94 = arith.constant 1.000000e+00 : f32
    %295 = vector.broadcast %cst_94 : f32 to vector<2x32xf32>
    %296 = arith.addf %295, %294 : vector<2x32xf32>
    %297 = arith.divf %295, %296 : vector<2x32xf32>
    %298 = arith.mulf %291, %267 : vector<2x32xf32>
    %299 = arith.mulf %286, %292 : vector<2x32xf32>
    %300 = arith.addf %298, %299 : vector<2x32xf32>
    %301 = math.tanh %300 : vector<2x32xf32>
    %302 = arith.mulf %297, %301 : vector<2x32xf32>
    %c0_95 = arith.constant 0 : index
    %c0_96 = arith.constant 0 : index
    %303 = vector.load %arg4[%c0_95, %c0_96] : memref<32x128xf32, #tpu.memory_space<vmem>>, vector<32x128xf32>
    %cst_97 = arith.constant dense<0.000000e+00> : vector<2x128xf32>
    %304 = tpu.matmul %302, %303, %cst_97 {dimension_numbers = #tpu.dot_dimension_numbers<[1], [0], [0], [1], [0, 0, 1, 1], [], []>} : vector<2x32xf32>, vector<32x128xf32>, vector<2x128xf32> -> vector<2x128xf32>
    %c0_98 = arith.constant 0 : index
    %c0_99 = arith.constant 0 : index
    %305 = vector.load %arg5[%c0_98, %c0_99] : memref<1x128xf32, #tpu.memory_space<vmem>>, vector<1x128xf32>
    %306 = vector.broadcast %305 : vector<1x128xf32> to vector<2x128xf32>
    %307 = arith.addf %304, %306 : vector<2x128xf32>
    %c0_100 = arith.constant 0 : index
    %c0_101 = arith.constant 0 : index
    %308 = vector.load %arg6[%c0_100, %c0_101] : memref<2x128xf32, #tpu.memory_space<vmem>>, vector<2x128xf32>
    tpu.vector_store %arg6[%c0_100, %c0_101], %307 {strides = array<i32>} : memref<2x128xf32, #tpu.memory_space<vmem>>, vector<2x128xf32>,
    return
  }
}

</mosaic_0001>

<bundles_post_ra>
// kernel: tpu_custom_call.1
= control target key start
LH: loop header
LB: loop body
LE: loop exit
PB: predicated region body
PF: predicated region fallthrough
CT: control target
= control target key end

     0   :  { %11 = vsyncpa [#allocation3], 0  ;;  %s4730_s0 = inlined_call_operand.hbm [shape: f32[16,16], index: 0, kind: input, shape index: {}]   ;;  %s4731_s1 = inlined_call_operand.hbm [shape: f32[4,16,32], index: 1, kind: input, shape index: {}]   ;;  %s4732_s2 = inlined_call_operand.hbm [shape: f32[4,32,32], index: 2, kind: input, shape index: {}]   ;;  %s4733_s3 = inlined_call_operand.vmem [shape: f32[4,1,32], index: 3, kind: input, shape index: {}]   ;;  %s4734_s4 = inlined_call_operand.hbm [shape: f32[32,128], index: 4, kind: input, shape index: {}]   ;;  %s4735_s5 = inlined_call_operand.vmem [shape: f32[1,128], index: 5, kind: input, shape index: {}]   ;;  %s4736_s6 = inlined_call_operand.hbm [shape: f32[2,128], index: 6, kind: output, shape index: {}]  }
   0x1   :  { %12 = vsyncpa [#allocation6], 0 }
   0x2   :  { %13 = vsyncpa [#allocation9], 0 }
   0x3   :  { %14 = vsyncpa [#allocation4], 0  ;;  %s4254_s21 = smov [#allocation5]   ;;  %s4255_s23 = smov [#allocation2]  }
   0x4   :  { %s32_s22 = sshll.u32 %s4254_s21, 4  ;;  %s20_s24 = sshll.u32 %s4255_s23, 4  ;;  %s33_s22 = int_to_ptr.vmem [resolvable:$true] %s32_s22  ;;  %s4300_s24 = int_to_ptr.vmem [resolvable:$true] %s20_s24 }
   0x5   :  { %s4136_s27 = scalar_lea.hbm %s4731_s1, 1024 }
   0x6   :  { %p4137_p0 = scmp.ne.s32.totalorder %s4731_s1, %s4136_s27  ;;  %p4140_p1 = scmp.lt.u32.totalorder %s4136_s27, %s4731_s1 }
   0x8   :  { %p4142_p2 = pnand %p4140_p1, %p4137_p0 }
   0xa   :  { %4145 = shalt.err (!%p4142_p2)
}
   0xb   :  { %s4146_s8 = scalar_lea.vmem %s33_s22, 1024  ;;  %p4151_p4 = scmp.lt.s32.totalorder %s33_s22, %s33_s22 }
   0xc   :  { %p4147_p3 = scmp.ne.s32.totalorder %s33_s22, %s4146_s8  ;;  %p4152_p5 = scmp.lt.s32.totalorder %s4146_s8, %s4146_s8 }
   0xe   :  { %p4153_p6 = por %p4152_p5, %p4151_p4 }
  0x10   :  { %p4154_p7 = pnand %p4153_p6, %p4147_p3 }
  0x12   :  { %4157 = shalt.err (!%p4154_p7)
}
  0x13   :  { %s4256_s9 = smov 128   ;;  %s4257_s10 = smov 8  }
  0x14   :  { %38 = dma.hbm_to_vmem [thread:$0]  %s4731_s1, 1024, %s33_s22, [#allocation6], %s4256_s9, %s4256_s9, %s4257_s10  }
  0x15   :  { %s4158_s15 = scalar_lea.hbm %s4730_s0, 256 }
  0x16   :  { %p4159_p8 = scmp.ne.s32.totalorder %s4730_s0, %s4158_s15  ;;  %p4162_p9 = scmp.lt.u32.totalorder %s4158_s15, %s4730_s0 }
  0x18   :  { %p4164_p10 = pnand %p4162_p9, %p4159_p8 }
  0x1a   :  { %4167 = shalt.err (!%p4164_p10)
}
  0x1b   :  { %s4168_s20 = scalar_lea.vmem %s4300_s24, 256  ;;  %p4173_p12 = scmp.lt.s32.totalorder %s4300_s24, %s4300_s24 }
  0x1c   :  { %p4169_p11 = scmp.ne.s32.totalorder %s4300_s24, %s4168_s20  ;;  %p4174_p13 = scmp.lt.s32.totalorder %s4168_s20, %s4168_s20 }
  0x1e   :  { %p4175_p0 = por %p4174_p13, %p4173_p12 }
  0x20   :  { %p4176_p1 = pnand %p4175_p0, %p4169_p11 }
  0x22   :  { %4179 = shalt.err (!%p4176_p1)
}
  0x23   :  { %26 = dma.hbm_to_vmem [thread:$0]  %s4730_s0, 256, %s4300_s24, [#allocation3], %s4256_s9, %s4256_s9, %s4257_s10  }
  0x24   :  { %s4258_s22 = smov [#allocation7]   ;;  %s4259_s25 = smov [#allocation8]  }
  0x25   :  { %s44_s23 = sshll.u32 %s4258_s22, 4  ;;  %s58_s26 = sshll.u32 %s4259_s25, 4  ;;  %s45_s23 = int_to_ptr.vmem [resolvable:$true] %s44_s23  ;;  %s4337_s26 = int_to_ptr.vmem [resolvable:$true] %s58_s26 }
  0x26   :  { %s4180_s29 = scalar_lea.hbm %s4732_s2, 2048 }
  0x27   :  { %p4181_p2 = scmp.ne.s32.totalorder %s4732_s2, %s4180_s29  ;;  %p4184_p3 = scmp.lt.u32.totalorder %s4180_s29, %s4732_s2 }
  0x29   :  { %p4186_p4 = pnand %p4184_p3, %p4181_p2 }
  0x2b   :  { %4189 = shalt.err (!%p4186_p4)
}
  0x2c   :  { %s4190_s0 = scalar_lea.vmem %s45_s23, 2048  ;;  %p4195_p6 = scmp.lt.s32.totalorder %s45_s23, %s45_s23 }
  0x2d   :  { %p4191_p5 = scmp.ne.s32.totalorder %s45_s23, %s4190_s0  ;;  %p4196_p7 = scmp.lt.s32.totalorder %s4190_s0, %s4190_s0 }
  0x2f   :  { %p4197_p8 = por %p4196_p7, %p4195_p6 }
  0x31   :  { %p4198_p9 = pnand %p4197_p8, %p4191_p5 }
  0x33   :  { %4201 = shalt.err (!%p4198_p9)
}
  0x34   :  { %50 = dma.hbm_to_vmem [thread:$0]  %s4732_s2, 2048, %s45_s23, [#allocation6], %s4256_s9, %s4256_s9, %s4257_s10  }
  0x35   :  { %s4202_s15 = scalar_lea.hbm %s4734_s4, 512 }
  0x36   :  { %p4203_p10 = scmp.ne.s32.totalorder %s4734_s4, %s4202_s15  ;;  %p4206_p11 = scmp.lt.u32.totalorder %s4202_s15, %s4734_s4 }
  0x38   :  { %p4208_p12 = pnand %p4206_p11, %p4203_p10 }
  0x3a   :  { %4211 = shalt.err (!%p4208_p12)
}
  0x3b   :  { %s4212_s20 = scalar_lea.vmem %s4337_s26, 512  ;;  %p4217_p0 = scmp.lt.s32.totalorder %s4337_s26, %s4337_s26 }
  0x3c   :  { %p4213_p13 = scmp.ne.s32.totalorder %s4337_s26, %s4212_s20  ;;  %p4218_p1 = scmp.lt.s32.totalorder %s4212_s20, %s4212_s20 }
  0x3e   :  { %p4219_p2 = por %p4218_p1, %p4217_p0 }
  0x40   :  { %p4220_p3 = pnand %p4219_p2, %p4213_p13 }
  0x42   :  { %4223 = shalt.err (!%p4220_p3)
}
  0x43   :  { %64 = dma.hbm_to_vmem [thread:$0]  %s4734_s4, 512, %s4337_s26, [#allocation9], %s4256_s9, %s4256_s9, %s4257_s10  }
  0x44   :  { %4246 = dma.done.wait [#allocation3], 256  }
  0x45   :  { %4247 = vsyncadd [#allocation3], 4294967040 }
  0x46   :  { %4248 = dma.done.wait [#allocation6], 3072  }
  0x47   :  { %4249 = vsyncadd [#allocation6], 4294964224 }
  0x48   :  { %4250 = dma.done.wait [#allocation9], 512  }
  0x49   :  { %4251 = vsyncadd [#allocation9], 4294966784  ;;  %vm90_vm0 = vcmask 130048   ;;  %v81_v0 = vld [vmem:[#allocation5] sm:$0xff]  ;;  %v82_v1 = vld [vmem:[#allocation5 + $0x8] sm:$0xff]  ;;  %v4260_v16 = vmov 0.0|0.0  }
  0x4a   :  { %v259_v2 = vld [vmem:[#allocation5 + $0x20] sm:$0xff]  ;;  %v3783_v3 = vpack.c.bf16 %v82_v1, %v81_v0  ;;  %v260_v4 = vld [vmem:[#allocation5 + $0x28] sm:$0xff]  ;;  %v79_v5 = vld [vmem:[#allocation2] sm:$0xff]  ;;  %vm4261_vm1 = vmmov 0   ;;  %v4262_v25 = vmov 0.0   ;;  %vm449_vm2 = vcmask 261120  }
  0x4b   :  { %v3791_v6 = vpack.c.bf16 %v260_v4, %v259_v2  ;;  %3396 = vmatprep.mubr.msk.f32.mxu1 %vm90_vm0, %v79_v5  ;;  %v173_v7 = vld [vmem:[#allocation5 + $0x10] sm:$0xff]  ;;  %v174_v8 = vld [vmem:[#allocation5 + $0x18] sm:$0xff]  ;;  %3410 = vmatprep.mubr.msk.f32.mxu0 %vm90_vm0, %v79_v5  ;;  %v430_v9 = vld [vmem:[#allocation7] sm:$0xff]  ;;  %v4263_v32 = vmov 1.0   ;;  %s4264_s28 = smov [#allocation10]  }
  0x4c   :  { %3784 = vmatprep.subr.bf16.mxu1 %v3783_v3  ;;  %v3787_v10 = vpack.c.bf16 %v174_v8, %v173_v7  ;;  %v431_v11 = vld [vmem:[#allocation7 + $0x8] sm:$0xff]  ;;  %v345_v12 = vld [vmem:[#allocation5 + $0x30] sm:$0xff]  ;;  %v346_v13 = vld [vmem:[#allocation5 + $0x38] sm:$0xff]  ;;  %s3127_s29 = sshll.u32 %s4264_s28, 4  ;;  %s3128_s29 = int_to_ptr.vmem [resolvable:$true] %s3127_s29 }
  0x4d   :  { %3792 = vmatprep.subr.bf16.mxu0 %v3791_v6  ;;  %3786 = vmatpush3.bf16.msra.mxu1 %v3783_v3  ;;  %v80_v14 = vld [vmem:[#allocation2 + $0x8] sm:$0xff]  ;;  %v4376_v15 = vpack.c.bf16 %v431_v11, %v430_v9  ;;  %v3795_v17 = vpack.c.bf16 %v346_v13, %v345_v12  ;;  %v432_v18 = vld [vmem:[#allocation7 + $0x10] sm:$0xff]  ;;  %v435_v21 = vld [vmem:[#allocation7 + $0x20] sm:$0xff]  ;;  %s4224_s30 = scalar_lea.vmem %s3128_s29, 32  ;;  %p4229_p5 = scmp.lt.s32.totalorder %s3128_s29, %s3128_s29 }
  0x4e   :  { %3794 = vmatpush3.bf16.msra.mxu0 %v3791_v6  ;;  %3788 = vmatprep.subr.bf16.mxu1 %v3787_v10  ;;  %v433_v19 = vld [vmem:[#allocation7 + $0x18] sm:$0xff]  ;;  %v436_v22 = vld [vmem:[#allocation7 + $0x28] sm:$0xff]  ;;  %v440_v23 = vld [vmem:[#allocation7 + $0x40] sm:$0xff]  ;;  %p4225_p4 = scmp.ne.s32.totalorder %s3128_s29, %s4224_s30  ;;  %p4230_p6 = scmp.lt.s32.totalorder %s4224_s30, %s4224_s30 }
  0x4f   :  { %3799 = vmatprep.subr.bf16.mxu0 %v4260_v16  ;;  %v4383_v20 = vpack.c.bf16 %v433_v19, %v432_v18  ;;  %v441_v24 = vld [vmem:[#allocation7 + $0x48] sm:$0xff]  ;;  %v4390_v26 = vpack.c.bf16 %v436_v22, %v435_v21  ;;  %v437_v28 = vld [vmem:[#allocation7 + $0x30] sm:$0xff]  ;;  %v438_v29 = vld [vmem:[#allocation7 + $0x38] sm:$0xff] }
  0x50   :  { %3397 = vmatmul.mubr.msk.f32.vlgmr.msra.gmra.mrb[0].mxu1 %vm90_vm0, %v80_v14  ;;  %v4394_v27 = vpack.c.bf16 %v441_v24, %v440_v23  ;;  %v442_v30 = vld [vmem:[#allocation7 + $0x50] sm:$0xff]  ;;  %v443_v31 = vld [vmem:[#allocation7 + $0x58] sm:$0xff]  ;;  %v4400_v33 = vpack.c.bf16 %v438_v29, %v437_v28  ;;  %v445_v35 = vld [vmem:[#allocation7 + $0x60] sm:$0xff]  ;;  %p4231_p7 = por %p4230_p6, %p4229_p5 }
  0x51   :  { %3790 = vmatpush3.bf16.msra.mxu1 %v3787_v10  ;;  %3411 = vmatmul.mubr.msk.f32.vlgmr.msra.gmra.mrb[0].mxu0 %vm90_vm0, %v80_v14  ;;  %v4404_v34 = vpack.c.bf16 %v443_v31, %v442_v30  ;;  %v446_v36 = vld [vmem:[#allocation7 + $0x68] sm:$0xff]  ;;  %v447_v38 = vld [vmem:[#allocation7 + $0x70] sm:$0xff]  ;;  %v448_v39 = vld [vmem:[#allocation7 + $0x78] sm:$0xff] }
  0x52   :  { %3801 = vmatpush3.bf16.msra.mxu0 %v4376_v15  ;;  %3403 = vmatprep.mubr.msk.f32.mxu1 %vm90_vm0, %v79_v5  ;;  %v4412_v37 = vpack.c.bf16 %v446_v36, %v445_v35  ;;  %v4420_v40 = vpack.c.bf16 %v448_v39, %v447_v38  ;;  %v3138_v41 = vld [vmem:[%s4733_s3] ss:$0 sm:$0xff]  ;;  %v3146_v42 = vld [vmem:[%s4733_s3 + $0x2] ss:$0 sm:$0xff]  ;;  %v3142_v47 = vld [vmem:[%s4733_s3 + $0x1] ss:$0 sm:$0xff]  ;;  %p4232_p8 = pnand %p4231_p7, %p4225_p4 }
  0x53   :  { %3796 = vmatprep.subr.bf16.mxu1 %v3795_v17  ;;  %3802 = vmatprep.subr.bf16.mxu0 %v4260_v16  ;;  %v3150_v53 = vld [vmem:[%s4733_s3 + $0x3] ss:$0 sm:$0xff] }
  0x54   :  { %3404 = vmatmul.mubr.msk.f32.vlgmr.msra.gmra.mrb[2].mxu1 %vm90_vm0, %v80_v14  ;;  %3428 = vmatprep.mubr.msk.f32.mxu0 %vm4261_vm1, %v4262_v25 }
  0x55   :  { %3798 = vmatpush3.bf16.msra.mxu1 %v3795_v17  ;;  %3417 = vmatprep.mubr.msk.f32.mxu1 %vm90_vm0, %v79_v5 }
  0x56   :  { %3804 = vmatpush3.bf16.msra.mxu0 %v4383_v20  ;;  %3805 = vmatprep.subr.bf16.mxu1 %v4260_v16 }
  0x57   :  { %3811 = vmatprep.subr.bf16.mxu0 %v4260_v16 }
  0x58   :  { %3418 = vmatmul.mubr.msk.f32.vlgmr.msra.gmra.mrb[4].mxu1 %vm90_vm0, %v80_v14 }
  0x59   :  { %3429 = vmatmul.mubr.msk.f32.vlgmr.msra.gmra.mrb[2].mxu0 %vm449_vm2, %v4263_v32  ;;  %3807 = vmatpush3.bf16.msra.mxu1 %v4390_v26 }
  0x5a   :  { %3813 = vmatpush3.bf16.msra.mxu0 %v4394_v27  ;;  %3808 = vmatprep.subr.bf16.mxu1 %v4260_v16 }
  0x5b   :  { %3814 = vmatprep.subr.bf16.mxu0 %v4260_v16  ;;  %3439 = vmatprep.mubr.msk.f32.mxu1 %vm4261_vm1, %v4262_v25 }
  0x5c   :  { %3450 = vmatprep.mubr.msk.f32.mxu0 %vm4261_vm1, %v4262_v25 }
  0x5d   :  { %3810 = vmatpush3.bf16.msra.mxu1 %v4400_v33 }
  0x5e   :  { %3816 = vmatpush3.bf16.msra.mxu0 %v4404_v34  ;;  %3817 = vmatprep.subr.bf16.mxu1 %v4260_v16 }
  0x5f   :  { %3823 = vmatprep.subr.bf16.mxu0 %v4260_v16 }
  0x60   :  { %3440 = vmatmul.mubr.msk.f32.vlgmr.msra.gmra.mrb[6].mxu1 %vm449_vm2, %v4263_v32 }
  0x61   :  { %3451 = vmatmul.mubr.msk.f32.vlgmr.msra.gmra.mrb[4].mxu0 %vm449_vm2, %v4263_v32  ;;  %3819 = vmatpush3.bf16.msra.mxu1 %v4412_v37 }
  0x62   :  { %3820 = vmatprep.subr.bf16.mxu1 %v4260_v16  ;;  %3461 = vmatprep.mubr.msk.f32.mxu1 %vm4261_vm1, %v4262_v25 }
  0x63   :  { %3825 = vmatpush3.bf16.msra.mxu0 %v4376_v15  ;;  %3472 = vmatprep.mubr.msk.f32.mxu0 %vm4261_vm1, %v4262_v25 }
  0x64   :  { %3826 = vmatprep.subr.bf16.mxu0 %v4260_v16 }
  0x65   :  { %3822 = vmatpush3.bf16.msra.mxu1 %v4420_v40 }
  0x66   :  { %3829 = vmatprep.subr.bf16.mxu1 %v4260_v16 }
  0x67   :  { %3828 = vmatpush3.bf16.msra.mxu0 %v4383_v20 }
  0x68   :  { %3462 = vmatmul.mubr.msk.f32.vlgmr.msra.gmra.mrb[8].mxu1 %vm449_vm2, %v4263_v32  ;;  %3835 = vmatprep.subr.bf16.mxu0 %v4260_v16 }
  0x69   :  { %3831 = vmatpush3.bf16.msra.mxu1 %v4390_v26  ;;  %3483 = vmatprep.mubr.msk.f32.mxu1 %vm4261_vm1, %v4262_v25 }
  0x6a   :  { %3832 = vmatprep.subr.bf16.mxu1 %v4260_v16 }
  0x6d   :  { %3834 = vmatpush3.bf16.msra.mxu1 %v4400_v33 }
  0x6e   :  { %3841 = vmatprep.subr.bf16.mxu1 %v4260_v16 }
 0x123   :  { %v3398_v43 = vpop.f32.mrb[0].mxu1 }
 0x124   :  { %v4446_v44 = vadd.f32 %v3398_v43, %v3138_v41  ;;  %v163_v45 = vpop.f32.mrb[1].mxu1  ;;  %v3412_v46 = vpop.f32.mrb[0].mxu0 }
 0x125   :  { %v4451_v48 = vadd.f32 %v3412_v46, %v3146_v42  ;;  %v335_v49 = vpop.f32.mrb[1].mxu0  ;;  %v4458_v54 = vadd.f32 %v3138_v41, %v163_v45 }
 0x126   :  { %v4466_v5 = vadd.f32 %v3146_v42, %v335_v49 }
 0x127   :  { %v3405_v50 = vpop.f32.mrb[2].mxu1 }
 0x128   :  { %v4453_v51 = vadd.f32 %v3405_v50, %v3142_v47  ;;  %v249_v52 = vpop.f32.mrb[3].mxu1 }
 0x129   :  { %v4463_v62 = vadd.f32 %v3142_v47, %v249_v52 }
 0x12b   :  { %v3419_v55 = vpop.f32.mrb[4].mxu1 }
 0x12c   :  { %v4460_v56 = vadd.f32 %v3419_v55, %v3150_v53  ;;  %v519_v57 = vpop.f32.mrb[2].mxu0  ;;  %v421_v58 = vpop.f32.mrb[5].mxu1 }
 0x12d   :  { %v523_v59 = vadd.f32 %v519_v57, %v4458_v54  ;;  %v3430_v60 = vpop.f32.mrb[3].mxu0  ;;  %v4469_v7 = vadd.f32 %v3150_v53, %v421_v58 }
 0x12f   :  { %v3157_v61 = vmul.f32 -1.442695, %v523_v59 }
 0x131   :  { %4008 = vpow2.f32 %v3157_v61 }
 0x133   :  { %v590_v63 = vpop.f32.mrb[6].mxu1 }
 0x134   :  { %v594_v0 = vadd.f32 %v590_v63, %v4463_v62  ;;  %v661_v1 = vpop.f32.mrb[4].mxu0  ;;  %v3441_v2 = vpop.f32.mrb[7].mxu1 }
 0x135   :  { %v3452_v3 = vpop.f32.mrb[5].mxu0  ;;  %v665_v6 = vadd.f32 %v661_v1, %v4466_v5 }
 0x136   :  { %v3158_v4 = vmul.f32 -1.442695, %v594_v0 }
 0x138   :  { %4010 = vpow2.f32 %v3158_v4 }
 0x139   :  { %4012 = vtanh.f32 %v665_v6 }
 0x13b   :  { %v4009_v8 = vpop.eup %4008  ;;  %v732_v9 = vpop.f32.mrb[8].mxu1 }
 0x13c   :  { %v740_v10 = vadd.f32 1.0, %v4009_v8  ;;  %v736_v11 = vadd.f32 %v732_v9, %v4469_v7  ;;  %v3463_v12 = vpop.f32.mrb[9].mxu1 }
 0x13e   :  { %4014 = vrcp.f32 %v740_v10  ;;  %v3159_v13 = vmul.f32 -1.442695, %v736_v11 }
 0x140   :  { %4016 = vpow2.f32 %v3159_v13 }
 0x142   :  { %v4011_v14 = vpop.eup %4010 }
 0x143   :  { %v746_v17 = vadd.f32 1.0, %v4011_v14  ;;  %v4013_v18 = vpop.eup %4012 }
 0x145   :  { %4018 = vrcp.f32 %v746_v17 }
 0x148   :  { %v4015_v19 = vpop.eup %4014 }
 0x149   :  { %v756_v21 = vmul.f32 %v4015_v19, %v4013_v18 }
 0x14a   :  { %v4017_v22 = vpop.eup %4016 }
 0x14b   :  { %v753_v23 = vadd.f32 1.0, %v4017_v22 }
 0x14d   :  { %4020 = vrcp.f32 %v753_v23 }
 0x14f   :  { %v4019_v24 = vpop.eup %4018 }
 0x150   :  { %v4472_v28 = vadd.f32 %v4019_v24, %v756_v21 }
 0x152   :  { %4022 = vtanh.f32 %v4472_v28  ;;  %v1079_v4 = vrot.slane %v4472_v28, 6 }
 0x157   :  { %v4021_v29 = vpop.eup %4020 }
 0x15c   :  { %v4023_v30 = vpop.eup %4022 }
 0x15d   :  { %v759_v31 = vmul.f32 %v4023_v30, %v4021_v29 }
 0x15f   :  { %3473 = vmatmul.mubr.msk.f32.vlgmr.msra.gmra.mrb[6].mxu0 %vm449_vm2, %v759_v31  ;;  %3484 = vmatmul.mubr.msk.f32.vlgmr.msra.gmra.mrb[10].mxu1 %vm449_vm2, %v759_v31 }
 0x160   :  { %3837 = vmatpush3.bf16.msra.mxu0 %v4394_v27  ;;  %3843 = vmatpush3.bf16.msra.mxu1 %v4412_v37 }
 0x161   :  { %3838 = vmatprep.subr.bf16.mxu0 %v4260_v16  ;;  %3844 = vmatprep.subr.bf16.mxu1 %v4260_v16 }
 0x162   :  { %3494 = vmatprep.mubr.msk.f32.mxu0 %vm4261_vm1, %v4262_v25  ;;  %3505 = vmatprep.mubr.msk.f32.mxu1 %vm4261_vm1, %v4262_v25 }
 0x164   :  { %3840 = vmatpush3.bf16.msra.mxu0 %v4404_v34  ;;  %3846 = vmatpush3.bf16.msra.mxu1 %v4420_v40 }
 0x165   :  { %3847 = vmatprep.subr.bf16.mxu0 %v4260_v16  ;;  %3853 = vmatprep.subr.bf16.mxu1 %v4260_v16 }
 0x167   :  { %3495 = vmatmul.mubr.msk.f32.vlgmr.msra.gmra.mrb[8].mxu0 %vm449_vm2, %v759_v31  ;;  %3506 = vmatmul.mubr.msk.f32.vlgmr.msra.gmra.mrb[12].mxu1 %vm449_vm2, %v759_v31 }
 0x168   :  { %3849 = vmatpush3.bf16.msra.mxu0 %v4376_v15  ;;  %3855 = vmatpush3.bf16.msra.mxu1 %v4390_v26 }
 0x169   :  { %3850 = vmatprep.subr.bf16.mxu0 %v4260_v16  ;;  %3856 = vmatprep.subr.bf16.mxu1 %v4260_v16 }
 0x16a   :  { %3516 = vmatprep.mubr.msk.f32.mxu0 %vm4261_vm1, %v4262_v25  ;;  %3527 = vmatprep.mubr.msk.f32.mxu1 %vm4261_vm1, %v4262_v25 }
 0x16c   :  { %3852 = vmatpush3.bf16.msra.mxu0 %v4383_v20  ;;  %3858 = vmatpush3.bf16.msra.mxu1 %v4400_v33 }
 0x16d   :  { %3859 = vmatprep.subr.bf16.mxu0 %v4260_v16  ;;  %3865 = vmatprep.subr.bf16.mxu1 %v4260_v16 }
 0x232   :  { %v829_v32 = vpop.f32.mrb[6].mxu0  ;;  %v903_v35 = vpop.f32.mrb[10].mxu1 }
 0x233   :  { %v834_v36 = vrot.slane %v829_v32, 6  ;;  %v908_v38 = vrot.slane %v903_v35, 6  ;;  %v3474_v39 = vpop.f32.mrb[7].mxu0  ;;  %v3485_v41 = vpop.f32.mrb[11].mxu1 }
 0x235   :  { %v836_v42 = vadd.f32 %v834_v36, %v4458_v54  ;;  %v910_v43 = vadd.f32 %v908_v38, %v4463_v62 }
 0x237   :  { %v3164_v45 = vmul.f32 -1.442695, %v836_v42  ;;  %v3165_v46 = vmul.f32 -1.442695, %v910_v43 }
 0x239   :  { %4024 = vpow2.f32 %v3164_v45 }
 0x23a   :  { %4026 = vpow2.f32 %v3165_v46  ;;  %v977_v47 = vpop.f32.mrb[8].mxu0  ;;  %v1051_v49 = vpop.f32.mrb[12].mxu1 }
 0x23b   :  { %v1056_v50 = vrot.slane %v1051_v49, 6  ;;  %v3496_v52 = vpop.f32.mrb[9].mxu0  ;;  %v3507_v53 = vpop.f32.mrb[13].mxu1  ;;  %v982_v55 = vrot.slane %v977_v47, 6 }
 0x23d   :  { %v1058_v57 = vadd.f32 %v1056_v50, %v4469_v7  ;;  %v984_v59 = vadd.f32 %v982_v55, %v4466_v5 }
 0x23f   :  { %v3166_v58 = vmul.f32 -1.442695, %v1058_v57 }
 0x241   :  { %4028 = vpow2.f32 %v3166_v58 }
 0x242   :  { %4030 = vtanh.f32 %v984_v59 }
 0x243   :  { %v4025_v60 = vpop.eup %4024 }
 0x244   :  { %v4027_v61 = vpop.eup %4026  ;;  %v1062_v63 = vadd.f32 1.0, %v4025_v60 }
 0x245   :  { %v1068_v0 = vadd.f32 1.0, %v4027_v61 }
 0x246   :  { %4032 = vrcp.f32 %v1062_v63 }
 0x247   :  { %4034 = vrcp.f32 %v1068_v0 }
 0x24b   :  { %v4029_v1 = vpop.eup %4028 }
 0x24c   :  { %v4031_v2 = vpop.eup %4030  ;;  %v1075_v9 = vadd.f32 1.0, %v4029_v1 }
 0x24e   :  { %4036 = vrcp.f32 %v1075_v9 }
 0x250   :  { %v4033_v3 = vpop.eup %4032 }
 0x251   :  { %v4035_v6 = vpop.eup %4034  ;;  %v1082_v8 = vmul.f32 %v4033_v3, %v4031_v2 }
 0x252   :  { %v1081_v10 = vmul.f32 %v4035_v6, %v1079_v4 }
 0x254   :  { %v4508_v11 = vadd.f32 %v1082_v8, %v1081_v10 }
 0x256   :  { %4038 = vtanh.f32 %v4508_v11  ;;  %v1406_v57 = vrot.slane %v4508_v11, 6 }
 0x258   :  { %v4037_v12 = vpop.eup %4036 }
 0x260   :  { %v4039_v13 = vpop.eup %4038 }
 0x261   :  { %v1085_v14 = vmul.f32 %v4039_v13, %v4037_v12 }
 0x263   :  { %v1087_v17 = vrot.slane %v1085_v14, 2 }
 0x265   :  { %3517 = vmatmul.mubr.msk.f32.vlgmr.msra.gmra.mrb[10].mxu0 %vm449_vm2, %v1087_v17  ;;  %3528 = vmatmul.mubr.msk.f32.vlgmr.msra.gmra.mrb[14].mxu1 %vm449_vm2, %v1087_v17 }
 0x266   :  { %3861 = vmatpush3.bf16.msra.mxu0 %v4394_v27  ;;  %3867 = vmatpush3.bf16.msra.mxu1 %v4412_v37 }
 0x267   :  { %3862 = vmatprep.subr.bf16.mxu0 %v4260_v16  ;;  %3868 = vmatprep.subr.bf16.mxu1 %v4260_v16 }
 0x268   :  { %3538 = vmatprep.mubr.msk.f32.mxu0 %vm4261_vm1, %v4262_v25  ;;  %3549 = vmatprep.mubr.msk.f32.mxu1 %vm4261_vm1, %v4262_v25 }
 0x26a   :  { %3864 = vmatpush3.bf16.msra.mxu0 %v4404_v34  ;;  %3870 = vmatpush3.bf16.msra.mxu1 %v4420_v40 }
 0x26b   :  { %3871 = vmatprep.subr.bf16.mxu0 %v4260_v16  ;;  %3877 = vmatprep.subr.bf16.mxu1 %v4260_v16 }
 0x26d   :  { %3539 = vmatmul.mubr.msk.f32.vlgmr.msra.gmra.mrb[12].mxu0 %vm449_vm2, %v1087_v17  ;;  %3550 = vmatmul.mubr.msk.f32.vlgmr.msra.gmra.mrb[16].mxu1 %vm449_vm2, %v1087_v17 }
 0x26e   :  { %3873 = vmatpush3.bf16.msra.mxu0 %v4376_v15  ;;  %3879 = vmatpush3.bf16.msra.mxu1 %v4390_v26 }
 0x26f   :  { %3874 = vmatprep.subr.bf16.mxu0 %v4260_v16  ;;  %3880 = vmatprep.subr.bf16.mxu1 %v4260_v16 }
 0x270   :  { %3560 = vmatprep.mubr.msk.f32.mxu0 %vm4261_vm1, %v4262_v25  ;;  %3571 = vmatprep.mubr.msk.f32.mxu1 %vm4261_vm1, %v4262_v25 }
 0x272   :  { %3876 = vmatpush3.bf16.msra.mxu0 %v4383_v20  ;;  %3882 = vmatpush3.bf16.msra.mxu1 %v4400_v33 }
 0x273   :  { %3883 = vmatprep.subr.bf16.mxu0 %v4260_v16  ;;  %3889 = vmatprep.subr.bf16.mxu1 %v4260_v16 }
 0x338   :  { %v1156_v18 = vpop.f32.mrb[10].mxu0  ;;  %v1230_v19 = vpop.f32.mrb[14].mxu1 }
 0x339   :  { %v1161_v21 = vrot.slane %v1156_v18, 4  ;;  %v1235_v22 = vrot.slane %v1230_v19, 4  ;;  %v3518_v23 = vpop.f32.mrb[11].mxu0  ;;  %v3529_v24 = vpop.f32.mrb[15].mxu1 }
 0x33b   :  { %v1163_v28 = vadd.f32 %v1161_v21, %v4458_v54  ;;  %v1237_v29 = vadd.f32 %v1235_v22, %v4463_v62 }
 0x33d   :  { %v3171_v30 = vmul.f32 -1.442695, %v1163_v28  ;;  %v3172_v31 = vmul.f32 -1.442695, %v1237_v29 }
 0x33f   :  { %4040 = vpow2.f32 %v3171_v30 }
 0x340   :  { %4042 = vpow2.f32 %v3172_v31  ;;  %v1304_v32 = vpop.f32.mrb[12].mxu0  ;;  %v1378_v35 = vpop.f32.mrb[16].mxu1 }
 0x341   :  { %v1383_v36 = vrot.slane %v1378_v35, 4  ;;  %v3540_v38 = vpop.f32.mrb[13].mxu0  ;;  %v3551_v39 = vpop.f32.mrb[17].mxu1  ;;  %v1309_v41 = vrot.slane %v1304_v32, 4 }
 0x343   :  { %v1385_v42 = vadd.f32 %v1383_v36, %v4469_v7  ;;  %v1311_v45 = vadd.f32 %v1309_v41, %v4466_v5 }
 0x345   :  { %v3173_v43 = vmul.f32 -1.442695, %v1385_v42 }
 0x347   :  { %4044 = vpow2.f32 %v3173_v43 }
 0x348   :  { %4046 = vtanh.f32 %v1311_v45 }
 0x349   :  { %v4041_v46 = vpop.eup %4040 }
 0x34a   :  { %v4043_v47 = vpop.eup %4042  ;;  %v1389_v49 = vadd.f32 1.0, %v4041_v46 }
 0x34b   :  { %v1395_v50 = vadd.f32 1.0, %v4043_v47 }
 0x34c   :  { %4048 = vrcp.f32 %v1389_v49 }
 0x34d   :  { %4050 = vrcp.f32 %v1395_v50 }
 0x351   :  { %v4045_v52 = vpop.eup %4044 }
 0x352   :  { %v4047_v53 = vpop.eup %4046  ;;  %v1402_v60 = vadd.f32 1.0, %v4045_v52 }
 0x354   :  { %4052 = vrcp.f32 %v1402_v60 }
 0x356   :  { %v4049_v55 = vpop.eup %4048 }
 0x357   :  { %v4051_v58 = vpop.eup %4050  ;;  %v1409_v59 = vmul.f32 %v4049_v55, %v4047_v53 }
 0x358   :  { %v1408_v61 = vmul.f32 %v4051_v58, %v1406_v57 }
 0x35a   :  { %v4544_v63 = vadd.f32 %v1409_v59, %v1408_v61 }
 0x35c   :  { %4054 = vtanh.f32 %v4544_v63  ;;  %v1733_v39 = vrot.slane %v4544_v63, 6 }
 0x35e   :  { %v4053_v0 = vpop.eup %4052 }
 0x366   :  { %v4055_v1 = vpop.eup %4054 }
 0x367   :  { %v1412_v2 = vmul.f32 %v4055_v1, %v4053_v0 }
 0x369   :  { %v1414_v3 = vrot.slane %v1412_v2, 4 }
 0x36b   :  { %3561 = vmatmul.mubr.msk.f32.vlgmr.msra.gmra.mrb[14].mxu0 %vm449_vm2, %v1414_v3  ;;  %3572 = vmatmul.mubr.msk.f32.vlgmr.msra.gmra.mrb[18].mxu1 %vm449_vm2, %v1414_v3 }
 0x36c   :  { %3885 = vmatpush3.bf16.msra.mxu0 %v4394_v27  ;;  %3891 = vmatpush3.bf16.msra.mxu1 %v4412_v37 }
 0x36d   :  { %3886 = vmatprep.subr.bf16.mxu0 %v4260_v16  ;;  %3892 = vmatprep.subr.bf16.mxu1 %v4260_v16 }
 0x36e   :  { %3582 = vmatprep.mubr.msk.f32.mxu0 %vm4261_vm1, %v4262_v25  ;;  %3593 = vmatprep.mubr.msk.f32.mxu1 %vm4261_vm1, %v4262_v25 }
 0x370   :  { %3888 = vmatpush3.bf16.msra.mxu0 %v4404_v34  ;;  %3894 = vmatpush3.bf16.msra.mxu1 %v4420_v40 }
 0x371   :  { %3895 = vmatprep.subr.bf16.mxu0 %v4260_v16  ;;  %3901 = vmatprep.subr.bf16.mxu1 %v4260_v16 }
 0x373   :  { %3583 = vmatmul.mubr.msk.f32.vlgmr.msra.gmra.mrb[16].mxu0 %vm449_vm2, %v1414_v3  ;;  %3594 = vmatmul.mubr.msk.f32.vlgmr.msra.gmra.mrb[20].mxu1 %vm449_vm2, %v1414_v3 }
 0x374   :  { %3897 = vmatpush3.bf16.msra.mxu0 %v4376_v15  ;;  %3903 = vmatpush3.bf16.msra.mxu1 %v4390_v26 }
 0x375   :  { %3898 = vmatprep.subr.bf16.mxu0 %v4260_v16  ;;  %3904 = vmatprep.subr.bf16.mxu1 %v4260_v16 }
 0x376   :  { %3604 = vmatprep.mubr.msk.f32.mxu0 %vm4261_vm1, %v4262_v25  ;;  %3615 = vmatprep.mubr.msk.f32.mxu1 %vm4261_vm1, %v4262_v25 }
 0x378   :  { %3900 = vmatpush3.bf16.msra.mxu0 %v4383_v20  ;;  %3906 = vmatpush3.bf16.msra.mxu1 %v4400_v33 }
 0x379   :  { %3907 = vmatprep.subr.bf16.mxu0 %v4260_v16  ;;  %3913 = vmatprep.subr.bf16.mxu1 %v4260_v16 }
 0x43e   :  { %v1483_v4 = vpop.f32.mrb[14].mxu0  ;;  %v1557_v6 = vpop.f32.mrb[18].mxu1 }
 0x43f   :  { %v1488_v8 = vrot.slane %v1483_v4, 2  ;;  %v1562_v9 = vrot.slane %v1557_v6, 2  ;;  %v3562_v10 = vpop.f32.mrb[15].mxu0  ;;  %v3573_v11 = vpop.f32.mrb[19].mxu1 }
 0x441   :  { %v1490_v12 = vadd.f32 %v1488_v8, %v4458_v54  ;;  %v1564_v13 = vadd.f32 %v1562_v9, %v4463_v62 }
 0x443   :  { %v3178_v14 = vmul.f32 -1.442695, %v1490_v12  ;;  %v3179_v17 = vmul.f32 -1.442695, %v1564_v13 }
 0x445   :  { %4056 = vpow2.f32 %v3178_v14 }
 0x446   :  { %4058 = vpow2.f32 %v3179_v17  ;;  %v1631_v18 = vpop.f32.mrb[16].mxu0  ;;  %v1705_v19 = vpop.f32.mrb[20].mxu1 }
 0x447   :  { %v1710_v21 = vrot.slane %v1705_v19, 2  ;;  %v3584_v22 = vpop.f32.mrb[17].mxu0  ;;  %v3595_v23 = vpop.f32.mrb[21].mxu1  ;;  %v1636_v24 = vrot.slane %v1631_v18, 2 }
 0x449   :  { %v1712_v28 = vadd.f32 %v1710_v21, %v4469_v7  ;;  %v1638_v30 = vadd.f32 %v1636_v24, %v4466_v5 }
 0x44b   :  { %v3180_v29 = vmul.f32 -1.442695, %v1712_v28 }
 0x44d   :  { %4060 = vpow2.f32 %v3180_v29 }
 0x44e   :  { %4062 = vtanh.f32 %v1638_v30 }
 0x44f   :  { %v4057_v31 = vpop.eup %4056 }
 0x450   :  { %v4059_v32 = vpop.eup %4058  ;;  %v1716_v54 = vadd.f32 1.0, %v4057_v31 }
 0x451   :  { %v1722_v62 = vadd.f32 1.0, %v4059_v32 }
 0x452   :  { %4064 = vrcp.f32 %v1716_v54 }
 0x453   :  { %4066 = vrcp.f32 %v1722_v62 }
 0x457   :  { %v4061_v35 = vpop.eup %4060 }
 0x458   :  { %v4063_v36 = vpop.eup %4062  ;;  %v1729_v43 = vadd.f32 1.0, %v4061_v35 }
 0x45a   :  { %4068 = vrcp.f32 %v1729_v43 }
 0x45c   :  { %v4065_v38 = vpop.eup %4064 }
 0x45d   :  { %v4067_v41 = vpop.eup %4066  ;;  %v1736_v42 = vmul.f32 %v4065_v38, %v4063_v36 }
 0x45e   :  { %v1735_v7 = vmul.f32 %v4067_v41, %v1733_v39 }
 0x460   :  { %v4580_v45 = vadd.f32 %v1736_v42, %v1735_v7 }
 0x462   :  { %4070 = vtanh.f32 %v4580_v45  ;;  %v2048_v14 = vrot.slane %v4580_v45, 6 }
 0x464   :  { %v4069_v5 = vpop.eup %4068 }
 0x46c   :  { %v4071_v46 = vpop.eup %4070 }
 0x46d   :  { %v1739_v47 = vmul.f32 %v4071_v46, %v4069_v5 }
 0x46f   :  { %v1741_v49 = vrot.slane %v1739_v47, 6 }
 0x471   :  { %3605 = vmatmul.mubr.msk.f32.vlgmr.msra.gmra.mrb[18].mxu0 %vm449_vm2, %v1741_v49  ;;  %3616 = vmatmul.mubr.msk.f32.vlgmr.msra.gmra.mrb[22].mxu1 %vm449_vm2, %v1741_v49 }
 0x472   :  { %3909 = vmatpush3.bf16.msra.mxu0 %v4394_v27  ;;  %3915 = vmatpush3.bf16.msra.mxu1 %v4412_v37 }
 0x473   :  { %3910 = vmatprep.subr.bf16.mxu0 %v4260_v16  ;;  %3916 = vmatprep.subr.bf16.mxu1 %v4260_v16 }
 0x474   :  { %3626 = vmatprep.mubr.msk.f32.mxu0 %vm4261_vm1, %v4262_v25  ;;  %3637 = vmatprep.mubr.msk.f32.mxu1 %vm4261_vm1, %v4262_v25 }
 0x476   :  { %3912 = vmatpush3.bf16.msra.mxu0 %v4404_v34  ;;  %3918 = vmatpush3.bf16.msra.mxu1 %v4420_v40 }
 0x477   :  { %3919 = vmatprep.subr.bf16.mxu0 %v4260_v16  ;;  %3925 = vmatprep.subr.bf16.mxu1 %v4260_v16 }
 0x479   :  { %3627 = vmatmul.mubr.msk.f32.vlgmr.msra.gmra.mrb[20].mxu0 %vm449_vm2, %v1741_v49  ;;  %3638 = vmatmul.mubr.msk.f32.vlgmr.msra.gmra.mrb[24].mxu1 %vm449_vm2, %v1741_v49 }
 0x47a   :  { %3921 = vmatpush3.bf16.msra.mxu0 %v4376_v15  ;;  %3927 = vmatpush3.bf16.msra.mxu1 %v4390_v26 }
 0x47b   :  { %3922 = vmatprep.subr.bf16.mxu0 %v4260_v16  ;;  %3928 = vmatprep.subr.bf16.mxu1 %v4260_v16 }
 0x47c   :  { %3648 = vmatprep.mubr.msk.f32.mxu0 %vm4261_vm1, %v4262_v25  ;;  %3659 = vmatprep.mubr.msk.f32.mxu1 %vm4261_vm1, %v4262_v25 }
 0x47e   :  { %3924 = vmatpush3.bf16.msra.mxu0 %v4383_v20  ;;  %3930 = vmatpush3.bf16.msra.mxu1 %v4400_v33 }
 0x47f   :  { %3931 = vmatprep.subr.bf16.mxu0 %v4260_v16  ;;  %3937 = vmatprep.subr.bf16.mxu1 %v4260_v16 }
 0x544   :  { %v1810_v50 = vpop.f32.mrb[18].mxu0  ;;  %v1881_v52 = vpop.f32.mrb[22].mxu1 }
 0x545   :  { %v1814_v53 = vadd.f32 %v1810_v50, %v4446_v44  ;;  %v1885_v55 = vadd.f32 %v1881_v52, %v4453_v51  ;;  %v3606_v57 = vpop.f32.mrb[19].mxu0  ;;  %v3617_v58 = vpop.f32.mrb[23].mxu1 }
 0x547   :  { %v3185_v59 = vmul.f32 -1.442695, %v1814_v53  ;;  %v3186_v60 = vmul.f32 -1.442695, %v1885_v55 }
 0x549   :  { %4072 = vpow2.f32 %v3185_v59 }
 0x54a   :  { %4074 = vpow2.f32 %v3186_v60 }
 0x54c   :  { %v1952_v61 = vpop.f32.mrb[20].mxu0  ;;  %v2023_v63 = vpop.f32.mrb[24].mxu1 }
 0x54d   :  { %v2027_v0 = vadd.f32 %v2023_v63, %v4460_v56  ;;  %v3628_v1 = vpop.f32.mrb[21].mxu0  ;;  %v3639_v2 = vpop.f32.mrb[25].mxu1  ;;  %v1956_v4 = vadd.f32 %v1952_v61, %v4451_v48 }
 0x54f   :  { %v3187_v3 = vmul.f32 -1.442695, %v2027_v0 }
 0x551   :  { %4076 = vpow2.f32 %v3187_v3 }
 0x552   :  { %4078 = vtanh.f32 %v1956_v4 }
 0x553   :  { %v4073_v6 = vpop.eup %4072 }
 0x554   :  { %v4075_v8 = vpop.eup %4074  ;;  %v2031_v9 = vadd.f32 1.0, %v4073_v6 }
 0x555   :  { %v2037_v10 = vadd.f32 1.0, %v4075_v8 }
 0x556   :  { %4080 = vrcp.f32 %v2031_v9 }
 0x557   :  { %4082 = vrcp.f32 %v2037_v10 }
 0x55b   :  { %v4077_v11 = vpop.eup %4076 }
 0x55c   :  { %v4079_v12 = vpop.eup %4078  ;;  %v2044_v19 = vadd.f32 1.0, %v4077_v11 }
 0x55e   :  { %4084 = vrcp.f32 %v2044_v19 }
 0x560   :  { %v4081_v13 = vpop.eup %4080 }
 0x561   :  { %v4083_v17 = vpop.eup %4082  ;;  %v2051_v18 = vmul.f32 %v4081_v13, %v4079_v12 }
 0x562   :  { %v2050_v21 = vmul.f32 %v4083_v17, %v2048_v14 }
 0x564   :  { %v4616_v22 = vadd.f32 %v2051_v18, %v2050_v21 }
 0x566   :  { %4086 = vtanh.f32 %v4616_v22  ;;  %v2374_v60 = vrot.slane %v4616_v22, 6 }
 0x568   :  { %v4085_v23 = vpop.eup %4084 }
 0x570   :  { %v4087_v24 = vpop.eup %4086 }
 0x571   :  { %v2054_v28 = vmul.f32 %v4087_v24, %v4085_v23 }
 0x573   :  { %3649 = vmatmul.mubr.msk.f32.vlgmr.msra.gmra.mrb[22].mxu0 %vm449_vm2, %v2054_v28  ;;  %3660 = vmatmul.mubr.msk.f32.vlgmr.msra.gmra.mrb[26].mxu1 %vm449_vm2, %v2054_v28 }
 0x574   :  { %3933 = vmatpush3.bf16.msra.mxu0 %v4394_v27  ;;  %3939 = vmatpush3.bf16.msra.mxu1 %v4412_v37 }
 0x575   :  { %3934 = vmatprep.subr.bf16.mxu0 %v4260_v16  ;;  %3940 = vmatprep.subr.bf16.mxu1 %v4260_v16 }
 0x576   :  { %3670 = vmatprep.mubr.msk.f32.mxu0 %vm4261_vm1, %v4262_v25  ;;  %3681 = vmatprep.mubr.msk.f32.mxu1 %vm4261_vm1, %v4262_v25 }
 0x578   :  { %3936 = vmatpush3.bf16.msra.mxu0 %v4404_v34  ;;  %3942 = vmatpush3.bf16.msra.mxu1 %v4420_v40 }
 0x579   :  { %3943 = vmatprep.subr.bf16.mxu0 %v4260_v16  ;;  %3949 = vmatprep.subr.bf16.mxu1 %v4260_v16 }
 0x57b   :  { %3671 = vmatmul.mubr.msk.f32.vlgmr.msra.gmra.mrb[24].mxu0 %vm449_vm2, %v2054_v28  ;;  %3682 = vmatmul.mubr.msk.f32.vlgmr.msra.gmra.mrb[28].mxu1 %vm449_vm2, %v2054_v28 }
 0x57c   :  { %3945 = vmatpush3.bf16.msra.mxu0 %v4376_v15  ;;  %3951 = vmatpush3.bf16.msra.mxu1 %v4390_v26 }
 0x57d   :  { %3946 = vmatprep.subr.bf16.mxu0 %v4260_v16  ;;  %3952 = vmatprep.subr.bf16.mxu1 %v4260_v16 }
 0x57e   :  { %3692 = vmatprep.mubr.msk.f32.mxu0 %vm4261_vm1, %v4262_v25  ;;  %3703 = vmatprep.mubr.msk.f32.mxu1 %vm4261_vm1, %v4262_v25 }
 0x580   :  { %3948 = vmatpush3.bf16.msra.mxu0 %v4383_v20  ;;  %3954 = vmatpush3.bf16.msra.mxu1 %v4400_v33 }
 0x581   :  { %3955 = vmatprep.subr.bf16.mxu0 %v4260_v16  ;;  %3961 = vmatprep.subr.bf16.mxu1 %v4260_v16 }
 0x646   :  { %v2124_v29 = vpop.f32.mrb[22].mxu0  ;;  %v2198_v30 = vpop.f32.mrb[26].mxu1 }
 0x647   :  { %v2129_v31 = vrot.slane %v2124_v29, 6  ;;  %v2203_v32 = vrot.slane %v2198_v30, 6  ;;  %v3650_v54 = vpop.f32.mrb[23].mxu0  ;;  %v3661_v62 = vpop.f32.mrb[27].mxu1 }
 0x649   :  { %v2131_v35 = vadd.f32 %v2129_v31, %v4446_v44  ;;  %v2205_v36 = vadd.f32 %v2203_v32, %v4453_v51 }
 0x64b   :  { %v3192_v38 = vmul.f32 -1.442695, %v2131_v35  ;;  %v3193_v39 = vmul.f32 -1.442695, %v2205_v36 }
 0x64d   :  { %4088 = vpow2.f32 %v3192_v38 }
 0x64e   :  { %4090 = vpow2.f32 %v3193_v39  ;;  %v2272_v41 = vpop.f32.mrb[24].mxu0  ;;  %v2346_v42 = vpop.f32.mrb[28].mxu1 }
 0x64f   :  { %v2351_v43 = vrot.slane %v2346_v42, 6  ;;  %v3672_v7 = vpop.f32.mrb[25].mxu0  ;;  %v3683_v45 = vpop.f32.mrb[29].mxu1  ;;  %v2277_v5 = vrot.slane %v2272_v41, 6 }
 0x651   :  { %v2353_v46 = vadd.f32 %v2351_v43, %v4460_v56  ;;  %v2279_v49 = vadd.f32 %v2277_v5, %v4451_v48 }
 0x653   :  { %v3194_v47 = vmul.f32 -1.442695, %v2353_v46 }
 0x655   :  { %4092 = vpow2.f32 %v3194_v47 }
 0x656   :  { %4094 = vtanh.f32 %v2279_v49  ;;  %v3037_v49 = vld [vmem:[#allocation8 + $0x10] sm:$0xff] }
 0x657   :  { %v4089_v50 = vpop.eup %4088 }
 0x658   :  { %v4091_v52 = vpop.eup %4090  ;;  %v2357_v53 = vadd.f32 1.0, %v4089_v50 }
 0x659   :  { %v2363_v55 = vadd.f32 1.0, %v4091_v52  ;;  %v3038_v52 = vld [vmem:[#allocation8 + $0x18] sm:$0xff] }
 0x65a   :  { %4096 = vrcp.f32 %v2357_v53  ;;  %v3995_v53 = vpack.c.bf16 %v3038_v52, %v3037_v49 }
 0x65b   :  { %4098 = vrcp.f32 %v2363_v55 }
 0x65f   :  { %v4093_v57 = vpop.eup %4092 }
 0x660   :  { %v4095_v58 = vpop.eup %4094  ;;  %v2370_v0 = vadd.f32 1.0, %v4093_v57 }
 0x662   :  { %4100 = vrcp.f32 %v2370_v0 }
 0x664   :  { %v4097_v59 = vpop.eup %4096 }
 0x665   :  { %v4099_v61 = vpop.eup %4098  ;;  %v2377_v63 = vmul.f32 %v4097_v59, %v4095_v58 }
 0x666   :  { %v2376_v1 = vmul.f32 %v4099_v61, %v2374_v60 }
 0x668   :  { %v4652_v2 = vadd.f32 %v2377_v63, %v2376_v1 }
 0x66a   :  { %4102 = vtanh.f32 %v4652_v2  ;;  %v2701_v38 = vrot.slane %v4652_v2, 6 }
 0x66c   :  { %v4101_v3 = vpop.eup %4100 }
 0x674   :  { %v4103_v4 = vpop.eup %4102 }
 0x675   :  { %v2380_v6 = vmul.f32 %v4103_v4, %v4101_v3 }
 0x677   :  { %v2382_v8 = vrot.slane %v2380_v6, 2 }
 0x679   :  { %3693 = vmatmul.mubr.msk.f32.vlgmr.msra.gmra.mrb[26].mxu0 %vm449_vm2, %v2382_v8  ;;  %3704 = vmatmul.mubr.msk.f32.vlgmr.msra.gmra.mrb[30].mxu1 %vm449_vm2, %v2382_v8 }
 0x67a   :  { %3957 = vmatpush3.bf16.msra.mxu0 %v4394_v27  ;;  %3963 = vmatpush3.bf16.msra.mxu1 %v4412_v37 }
 0x67b   :  { %3958 = vmatprep.subr.bf16.mxu0 %v4260_v16  ;;  %3964 = vmatprep.subr.bf16.mxu1 %v4260_v16 }
 0x67c   :  { %3714 = vmatprep.mubr.msk.f32.mxu0 %vm4261_vm1, %v4262_v25  ;;  %3725 = vmatprep.mubr.msk.f32.mxu1 %vm4261_vm1, %v4262_v25 }
 0x67e   :  { %3960 = vmatpush3.bf16.msra.mxu0 %v4404_v34  ;;  %3966 = vmatpush3.bf16.msra.mxu1 %v4420_v40 }
 0x67f   :  { %3967 = vmatprep.subr.bf16.mxu0 %v4260_v16  ;;  %3973 = vmatprep.subr.bf16.mxu1 %v4260_v16 }
 0x681   :  { %3715 = vmatmul.mubr.msk.f32.vlgmr.msra.gmra.mrb[28].mxu0 %vm449_vm2, %v2382_v8  ;;  %3726 = vmatmul.mubr.msk.f32.vlgmr.msra.gmra.mrb[32].mxu1 %vm449_vm2, %v2382_v8 }
 0x682   :  { %3969 = vmatpush3.bf16.msra.mxu0 %v4376_v15  ;;  %3975 = vmatpush3.bf16.msra.mxu1 %v4390_v26 }
 0x683   :  { %3970 = vmatprep.subr.bf16.mxu0 %v4260_v16  ;;  %3976 = vmatprep.subr.bf16.mxu1 %v4260_v16 }
 0x684   :  { %3736 = vmatprep.mubr.msk.f32.mxu0 %vm4261_vm1, %v4262_v25  ;;  %3747 = vmatprep.mubr.msk.f32.mxu1 %vm4261_vm1, %v4262_v25 }
 0x686   :  { %3972 = vmatpush3.bf16.msra.mxu0 %v4383_v20  ;;  %3978 = vmatpush3.bf16.msra.mxu1 %v4400_v33 }
 0x687   :  { %3979 = vmatprep.subr.bf16.mxu0 %v4260_v16  ;;  %3985 = vmatprep.subr.bf16.mxu1 %v4260_v16 }
 0x74c   :  { %v2451_v15 = vpop.f32.mrb[26].mxu0  ;;  %v2525_v26 = vpop.f32.mrb[30].mxu1 }
 0x74d   :  { %v2456_v9 = vrot.slane %v2451_v15, 4  ;;  %v2530_v10 = vrot.slane %v2525_v26, 4  ;;  %v3694_v11 = vpop.f32.mrb[27].mxu0  ;;  %v3705_v12 = vpop.f32.mrb[31].mxu1 }
 0x74f   :  { %v2458_v13 = vadd.f32 %v2456_v9, %v4446_v44  ;;  %v2532_v14 = vadd.f32 %v2530_v10, %v4453_v51 }
 0x751   :  { %v3199_v17 = vmul.f32 -1.442695, %v2458_v13  ;;  %v3200_v18 = vmul.f32 -1.442695, %v2532_v14 }
 0x753   :  { %4104 = vpow2.f32 %v3199_v17 }
 0x754   :  { %4106 = vpow2.f32 %v3200_v18  ;;  %v2599_v20 = vpop.f32.mrb[28].mxu0  ;;  %v2673_v33 = vpop.f32.mrb[32].mxu1 }
 0x755   :  { %v2678_v19 = vrot.slane %v2673_v33, 4  ;;  %v3716_v21 = vpop.f32.mrb[29].mxu0  ;;  %v3727_v22 = vpop.f32.mrb[33].mxu1  ;;  %v2604_v23 = vrot.slane %v2599_v20, 4 }
 0x756   :  { %v3209_v22 = vld [vmem:[%s4735_s5] ss:$0 sm:$0xff] }
 0x757   :  { %v2680_v24 = vadd.f32 %v2678_v19, %v4460_v56  ;;  %v2606_v29 = vadd.f32 %v2604_v23, %v4451_v48 }
 0x759   :  { %v3201_v28 = vmul.f32 -1.442695, %v2680_v24 }
 0x75b   :  { %4108 = vpow2.f32 %v3201_v28 }
 0x75c   :  { %4110 = vtanh.f32 %v2606_v29 }
 0x75d   :  { %v4105_v30 = vpop.eup %4104 }
 0x75e   :  { %v4107_v31 = vpop.eup %4106  ;;  %v2684_v32 = vadd.f32 1.0, %v4105_v30 }
 0x75f   :  { %v2690_v54 = vadd.f32 1.0, %v4107_v31 }
 0x760   :  { %4112 = vrcp.f32 %v2684_v32 }
 0x761   :  { %4114 = vrcp.f32 %v2690_v54 }
 0x765   :  { %v4109_v62 = vpop.eup %4108 }
 0x766   :  { %v4111_v35 = vpop.eup %4110  ;;  %v2697_v42 = vadd.f32 1.0, %v4109_v62 }
 0x768   :  { %4116 = vrcp.f32 %v2697_v42 }
 0x76a   :  { %v4113_v36 = vpop.eup %4112 }
 0x76b   :  { %v4115_v39 = vpop.eup %4114  ;;  %v2704_v41 = vmul.f32 %v4113_v36, %v4111_v35 }
 0x76c   :  { %v2703_v43 = vmul.f32 %v4115_v39, %v2701_v38 }
 0x76e   :  { %v4688_v7 = vadd.f32 %v2704_v41, %v2703_v43 }
 0x770   :  { %4118 = vtanh.f32 %v4688_v7  ;;  %v3028_v13 = vrot.slane %v4688_v7, 6 }
 0x772   :  { %v4117_v45 = vpop.eup %4116 }
 0x77a   :  { %v4119_v5 = vpop.eup %4118 }
 0x77b   :  { %v2707_v46 = vmul.f32 %v4119_v5, %v4117_v45 }
 0x77d   :  { %v2709_v47 = vrot.slane %v2707_v46, 4 }
 0x77f   :  { %3737 = vmatmul.mubr.msk.f32.vlgmr.msra.gmra.mrb[30].mxu0 %vm449_vm2, %v2709_v47  ;;  %3748 = vmatmul.mubr.msk.f32.vlgmr.msra.gmra.mrb[34].mxu1 %vm449_vm2, %v2709_v47 }
 0x780   :  { %3981 = vmatpush3.bf16.msra.mxu0 %v4394_v27  ;;  %3987 = vmatpush3.bf16.msra.mxu1 %v4412_v37  ;;  %v3035_v27 = vld [vmem:[#allocation8] sm:$0xff]  ;;  %v3036_v37 = vld [vmem:[#allocation8 + $0x8] sm:$0xff] }
 0x781   :  { %3982 = vmatprep.subr.bf16.mxu0 %v4260_v16  ;;  %3988 = vmatprep.subr.bf16.mxu1 %v4260_v16  ;;  %v3992_v50 = vpack.c.bf16 %v3036_v37, %v3035_v27 }
 0x782   :  { %3758 = vmatprep.mubr.msk.f32.mxu0 %vm4261_vm1, %v4262_v25  ;;  %3769 = vmatprep.mubr.msk.f32.mxu1 %vm4261_vm1, %v4262_v25 }
 0x784   :  { %3984 = vmatpush3.bf16.msra.mxu0 %v4404_v34  ;;  %3990 = vmatpush3.bf16.msra.mxu1 %v4420_v40 }
 0x785   :  { %3991 = vmatprep.subr.bf16.mxu0 %v4260_v16 }
 0x787   :  { %3759 = vmatmul.mubr.msk.f32.vlgmr.msra.gmra.mrb[32].mxu0 %vm449_vm2, %v2709_v47  ;;  %3770 = vmatmul.mubr.msk.f32.vlgmr.msra.gmra.mrb[36].mxu1 %vm449_vm2, %v2709_v47 }
 0x788   :  { %3780 = vmatprep.mubr.msk.f32.mxu0 %vm4261_vm1, %v4262_v25  ;;  %3993 = vmatpush3.bf16.msra.mxu0 %v3992_v50 }
 0x789   :  { %3994 = vmatprep.subr.bf16.mxu0 %v4260_v16 }
 0x78c   :  { %3996 = vmatpush3.bf16.msra.mxu0 %v3995_v53 }
 0x852   :  { %v2778_v34 = vpop.f32.mrb[30].mxu0  ;;  %v2852_v40 = vpop.f32.mrb[34].mxu1 }
 0x853   :  { %v2783_v55 = vrot.slane %v2778_v34, 2  ;;  %v2857_v57 = vrot.slane %v2852_v40, 2  ;;  %v3738_v58 = vpop.f32.mrb[31].mxu0  ;;  %v3749_v59 = vpop.f32.mrb[35].mxu1 }
 0x855   :  { %v2785_v60 = vadd.f32 %v2783_v55, %v4446_v44  ;;  %v2859_v25 = vadd.f32 %v2857_v57, %v4453_v51 }
 0x857   :  { %v3206_v61 = vmul.f32 -1.442695, %v2785_v60  ;;  %v3207_v63 = vmul.f32 -1.442695, %v2859_v25 }
 0x859   :  { %4120 = vpow2.f32 %v3206_v61 }
 0x85a   :  { %4122 = vpow2.f32 %v3207_v63  ;;  %v2926_v0 = vpop.f32.mrb[32].mxu0  ;;  %v3000_v1 = vpop.f32.mrb[36].mxu1 }
 0x85b   :  { %v3005_v2 = vrot.slane %v3000_v1, 2  ;;  %v3760_v3 = vpop.f32.mrb[33].mxu0  ;;  %v3771_v16 = vpop.f32.mrb[37].mxu1  ;;  %v2931_v4 = vrot.slane %v2926_v0, 2 }
 0x85d   :  { %v3007_v6 = vadd.f32 %v3005_v2, %v4460_v56  ;;  %v2933_v15 = vadd.f32 %v2931_v4, %v4451_v48 }
 0x85f   :  { %v3208_v8 = vmul.f32 -1.442695, %v3007_v6 }
 0x861   :  { %4124 = vpow2.f32 %v3208_v8 }
 0x862   :  { %4126 = vtanh.f32 %v2933_v15 }
 0x863   :  { %v4121_v26 = vpop.eup %4120 }
 0x864   :  { %v4123_v9 = vpop.eup %4122  ;;  %v3011_v44 = vadd.f32 1.0, %v4121_v26 }
 0x865   :  { %v3017_v51 = vadd.f32 1.0, %v4123_v9 }
 0x866   :  { %4128 = vrcp.f32 %v3011_v44 }
 0x867   :  { %4130 = vrcp.f32 %v3017_v51 }
 0x86b   :  { %v4125_v10 = vpop.eup %4124 }
 0x86c   :  { %v4127_v11 = vpop.eup %4126  ;;  %v3024_v18 = vadd.f32 1.0, %v4125_v10 }
 0x86e   :  { %4132 = vrcp.f32 %v3024_v18 }
 0x870   :  { %v4129_v12 = vpop.eup %4128 }
 0x871   :  { %v4131_v14 = vpop.eup %4130  ;;  %v3031_v17 = vmul.f32 %v4129_v12, %v4127_v11 }
 0x872   :  { %v3030_v56 = vmul.f32 %v4131_v14, %v3028_v13 }
 0x874   :  { %v3032_v20 = vadd.f32 %v3031_v17, %v3030_v56 }
 0x876   :  { %4134 = vtanh.f32 %v3032_v20 }
 0x878   :  { %v4133_v48 = vpop.eup %4132 }
 0x880   :  { %v4135_v33 = vpop.eup %4134 }
 0x881   :  { %v3034_v19 = vmul.f32 %v4135_v33, %v4133_v48 }
 0x883   :  { %v3047_v21 = vrot.slane %v3034_v19, 6 }
 0x885   :  { %3781 = vmatmul.mubr.msk.f32.vlgmr.msra.gmra.mrb[34].mxu0 %vm449_vm2, %v3047_v21 }
 0x958   :  { %v3116_v23 = vpop.f32.mrb[34].mxu0 }
 0x959   :  { %v3117_v24 = vadd.f32 %v3209_v22, %v3116_v23  ;;  %v3782_v28 = vpop.f32.mrb[35].mxu0 }
 0x95b   :  { %3120 = vst [vmem:[#allocation10] sm:$0x3] %v3117_v24 }
 0x95c   :  { %4235 = shalt.err (!%p4232_p8)
}
 0x95d   :  { %s4236_s11 = scalar_lea.hbm %s4736_s6, 32 }
 0x95e   :  { %p4237_p9 = scmp.ne.s32.totalorder %s4736_s6, %s4236_s11  ;;  %p4240_p10 = scmp.lt.u32.totalorder %s4236_s11, %s4736_s6 }
 0x960   :  { %p4242_p11 = pnand %p4240_p10, %p4237_p9 }
 0x962   :  { %4245 = shalt.err (!%p4242_p11)
}
 0x963   :  { %3130 = dma.vmem_to_hbm [thread:$0]  %s3128_s29, 32, %s4736_s6, [#allocation4]  }
 0x964   :  { %4252 = dma.done.wait [#allocation4], 32  }
 0x965   :  { %4253 = vsyncadd [#allocation4], 4294967264 }
 0x966   :  { %3134 = vsyncpa [#allocation3], 1 }
 0x967   :  { %3135 = vsyncpa [#allocation6], 1 }
 0x968   :  { %3136 = vsyncpa [#allocation9], 1 }
 0x969   :  { %3137 = vsyncpa [#allocation4], 1 }

</bundles_post_ra>
